<compile_context>
chip_gen: v6e
topology: v6e:2x2x1
jax: 0.10.0
libtpu: 0.0.40
codegen_flags: <defaults>
</compile_context>

<pallas_src>
import functools

import jax
import jax.numpy as jnp
from jax.experimental import pallas as pl
from jax.experimental.pallas import tpu as pltpu


# ---------------------------------------------------------------------------
# Pallas kernel
# ---------------------------------------------------------------------------
def convblock_kernel(xcol_ref, w_ref, g_ref, be_ref, o_ref,
                     *, n: int, l: int, pool: int, eps: float):
    """Fused Conv1d (as im2col matmul) + BatchNorm1d (batch stats) + MaxPool1d + ReLU.

    xcol_ref : (N*L, K*C_in)       im2col slab (built by the wrapper)
    w_ref    : (K*C_in, C_out)     folded conv weights
    g_ref    : (1, C_out)          batch-norm gamma
    be_ref   : (1, C_out)          batch-norm beta
    o_ref    : (N*(L//pool), C_out) pooled output (flat NLC layout)
    """
    # ---- Conv1d: one MXU matmul (bias omitted: cancels under batch-mean sub) --
    c = jnp.dot(xcol_ref[...], w_ref[...],
                preferred_element_type=jnp.float32)            # (N*L, C_out)
    c_out = c.shape[-1]

    # ---- BatchNorm1d (training mode: biased batch stats over N and L) --------
    mean = jnp.mean(c, axis=0, keepdims=True)                  # (1, C_out)
    var = jnp.mean((c - mean) ** 2, axis=0, keepdims=True)     # (1, C_out)
    scale = g_ref[...] * jax.lax.rsqrt(var + eps)              # (1, C_out)
    shift = be_ref[...] - mean * scale                         # (1, C_out)
    y = c * scale + shift                                      # (N*L, C_out)

    # ---- MaxPool1d(pool) along length (floor mode), then ReLU ---------------
    l_out = l // pool
    y = y.reshape(n, l, c_out)[:, :l_out * pool, :]            # drop tail per sample
    y = y.reshape(n * l_out, pool, c_out)
    pooled = jnp.max(y, axis=1)                                # (N*L_out, C_out)

    # ReLU after pool (equivalent, 1/pool the elementwise work); single dense store.
    o_ref[...] = jnp.maximum(pooled, 0.0)


# ---------------------------------------------------------------------------
# Wrapper (layout glue only: transposes, padding, im2col, weight fold)
# ---------------------------------------------------------------------------
def conv_block_forward(x_ncl, weight_oik, bias, gamma, beta,
                       *, kernel_size: int = 9, pool_size: int = 3,
                       eps: float = 1e-5):
    """x_ncl: (N, C_in, L); weight_oik: PyTorch layout (C_out, C_in, K).

    Returns (N, C_out, L // pool_size), matching ConvBlock.forward in train mode.
    """
    N, C_in, L = x_ncl.shape
    K = kernel_size
    C_out = weight_oik.shape[0]
    assert weight_oik.shape == (C_out, C_in, K)
    L_out = L // pool_size

    # PyTorch padding='same' (stride=1, dilation=1): left = (K-1)//2, right gets the rest.
    total_pad = K - 1
    pad_l = total_pad // 2
    pad_r = total_pad - pad_l

    x_nlc = jnp.transpose(x_ncl, (0, 2, 1)).astype(jnp.float32)      # (N, L, C_in)
    x_pad = jnp.pad(x_nlc, ((0, 0), (pad_l, pad_r), (0, 0)))         # (N, L+K-1, C_in)

    # im2col: (N, L, K*C_in) with k-major / c_in-minor ordering -> flatten rows.
    cols = jnp.concatenate([x_pad[:, k:k + L, :] for k in range(K)], axis=-1)
    xcol = cols.reshape(N * L, K * C_in)                             # (N*L, K*C_in)

    # Fold PyTorch weight (C_out, C_in, K) -> (K, C_in, C_out) -> (K*C_in, C_out),
    # matching the im2col column ordering (cross-correlation, as in nn.Conv1d).
    w2d = jnp.transpose(weight_oik, (2, 1, 0)).astype(jnp.float32).reshape(K * C_in, C_out)

    g2 = gamma.reshape(1, C_out).astype(jnp.float32)
    be2 = beta.reshape(1, C_out).astype(jnp.float32)
    # Conv bias is intentionally NOT passed to the kernel: train-mode BatchNorm
    # subtracts the per-channel batch mean, so the bias cancels exactly.
    del bias

    kern = functools.partial(convblock_kernel, n=N, l=L, pool=pool_size, eps=eps)

    out_flat = pl.pallas_call(
        kern,
        out_shape=jax.ShapeDtypeStruct((N * L_out, C_out), jnp.float32),
        in_specs=[pl.BlockSpec(memory_space=pltpu.MemorySpace.VMEM)] * 4,
        out_specs=pl.BlockSpec(memory_space=pltpu.MemorySpace.VMEM),
    )(xcol, w2d, g2, be2)

    out_nlc = out_flat.reshape(N, L_out, C_out)
    return jnp.transpose(out_nlc, (0, 2, 1))                         # back to NCL


# ---------------------------------------------------------------------------
# Pure-JAX reference (PyTorch semantics, including the bias) for the self-check
# ---------------------------------------------------------------------------
def conv_block_reference(x_ncl, weight_oik, bias, gamma, beta,
                         *, kernel_size: int = 9, pool_size: int = 3,
                         eps: float = 1e-5):
    N, C_in, L = x_ncl.shape
    K = kernel_size
    C_out = weight_oik.shape[0]
    L_out = L // pool_size
    total_pad = K - 1
    pad_l = total_pad // 2
    pad_r = total_pad - pad_l
    x_nlc = jnp.transpose(x_ncl, (0, 2, 1)).astype(jnp.float32)
    x_pad = jnp.pad(x_nlc, ((0, 0), (pad_l, pad_r), (0, 0)))
    conv = jnp.zeros((N, L, C_out), jnp.float32)
    for k in range(K):
        conv = conv + jnp.einsum('nlc,oc->nlo', x_pad[:, k:k + L, :],
                                 weight_oik[:, :, k])
    conv = conv + bias.reshape(1, 1, C_out)
    mean = conv.mean(axis=(0, 1), keepdims=True)
    var = ((conv - mean) ** 2).mean(axis=(0, 1), keepdims=True)
    y = (conv - mean) / jnp.sqrt(var + eps) * gamma.reshape(1, 1, C_out) \
        + beta.reshape(1, 1, C_out)
    y = jnp.maximum(y, 0.0)
    y = y[:, :L_out * pool_size, :].reshape(N, L_out, pool_size, C_out).max(axis=2)
    return jnp.transpose(y, (0, 2, 1))


# ---------------------------------------------------------------------------
if __name__ == "__main__":
    # Module hyper-params (defaults of ConvBlock)
    input_dim, out_dim, kernel_size, pool_size = 4, 256, 9, 3
    N, L = 2, 48                                   # small batch / sequence length

    key = jax.random.PRNGKey(0)
    kx, kw, kb, kg, kbe = jax.random.split(key, 5)

    x = jax.random.normal(kx, (N, input_dim, L), jnp.float32)            # NCL
    # Conv weight in PyTorch layout (C_out, C_in, K)
    weight = 0.1 * jax.random.normal(kw, (out_dim, input_dim, kernel_size),
                                     jnp.float32)
    bias = 0.1 * jax.random.normal(kb, (out_dim,), jnp.float32)
    gamma = 1.0 + 0.1 * jax.random.normal(kg, (out_dim,), jnp.float32)
    beta = 0.1 * jax.random.normal(kbe, (out_dim,), jnp.float32)

    out = conv_block_forward(x, weight, bias, gamma, beta,
                             kernel_size=kernel_size, pool_size=pool_size)
    out = jax.block_until_ready(out)

    ref = conv_block_reference(x, weight, bias, gamma, beta,
                               kernel_size=kernel_size, pool_size=pool_size)
    assert out.shape == (N, out_dim, L // pool_size)
    assert jnp.allclose(out, ref, atol=1e-4, rtol=1e-4)

    print("KERNEL_OK")
</pallas_src>

<mosaic_0001>
module attributes {stable_mosaic.version = 11 : i64} {
  func.func @convblock_kernel(%arg0: memref<96x36xf32, #tpu.memory_space<vmem>>, %arg1: memref<36x256xf32, #tpu.memory_space<vmem>>, %arg2: memref<1x256xf32, #tpu.memory_space<vmem>>, %arg3: memref<1x256xf32, #tpu.memory_space<vmem>>, %arg4: memref<32x256xf32, #tpu.memory_space<vmem>>) attributes {dimension_semantics = [], scalar_prefetch = 0 : i64, scratch_operands = 0 : i64, tpu.core_type = #tpu.core_type<tc>} {
    %c0 = arith.constant 0 : index
    %c0_0 = arith.constant 0 : index
    %0 = vector.load %arg0[%c0, %c0_0] : memref<96x36xf32, #tpu.memory_space<vmem>>, vector<96x36xf32>
    %c0_1 = arith.constant 0 : index
    %c0_2 = arith.constant 0 : index
    %1 = vector.load %arg1[%c0_1, %c0_2] : memref<36x256xf32, #tpu.memory_space<vmem>>, vector<36x256xf32>
    %cst = arith.constant dense<0.000000e+00> : vector<96x256xf32>
    %2 = tpu.matmul %0, %1, %cst {dimension_numbers = #tpu.dot_dimension_numbers<[1], [0], [0], [1], [0, 0, 1, 1], [], []>} : vector<96x36xf32>, vector<36x256xf32>, vector<96x256xf32> -> vector<96x256xf32>
    %cst_3 = arith.constant dense<0.000000e+00> : vector<256xf32>
    %3 = vector.multi_reduction <add>, %2, %cst_3 [0] : vector<96x256xf32> to vector<256xf32>
    %4 = vector.shape_cast %3 : vector<256xf32> to vector<1x256xf32>
    %cst_4 = arith.constant 9.600000e+01 : f32
    %5 = vector.broadcast %cst_4 : f32 to vector<1x256xf32>
    %6 = arith.divf %4, %5 : vector<1x256xf32>
    %7 = vector.broadcast %6 : vector<1x256xf32> to vector<96x256xf32>
    %8 = arith.subf %2, %7 : vector<96x256xf32>
    %9 = arith.mulf %8, %8 : vector<96x256xf32>
    %cst_5 = arith.constant dense<0.000000e+00> : vector<256xf32>
    %10 = vector.multi_reduction <add>, %9, %cst_5 [0] : vector<96x256xf32> to vector<256xf32>
    %11 = vector.shape_cast %10 : vector<256xf32> to vector<1x256xf32>
    %cst_6 = arith.constant 9.600000e+01 : f32
    %12 = vector.broadcast %cst_6 : f32 to vector<1x256xf32>
    %13 = arith.divf %11, %12 : vector<1x256xf32>
    %c0_7 = arith.constant 0 : index
    %c0_8 = arith.constant 0 : index
    %14 = vector.load %arg2[%c0_7, %c0_8] : memref<1x256xf32, #tpu.memory_space<vmem>>, vector<1x256xf32>
    %cst_9 = arith.constant 9.99999974E-6 : f32
    %15 = vector.broadcast %cst_9 : f32 to vector<1x256xf32>
    %16 = arith.addf %13, %15 : vector<1x256xf32>
    %17 = math.rsqrt %16 : vector<1x256xf32>
    %18 = arith.mulf %14, %17 : vector<1x256xf32>
    %c0_10 = arith.constant 0 : index
    %c0_11 = arith.constant 0 : index
    %19 = vector.load %arg3[%c0_10, %c0_11] : memref<1x256xf32, #tpu.memory_space<vmem>>, vector<1x256xf32>
    %20 = arith.mulf %6, %18 : vector<1x256xf32>
    %21 = arith.subf %19, %20 : vector<1x256xf32>
    %22 = vector.broadcast %18 : vector<1x256xf32> to vector<96x256xf32>
    %23 = arith.mulf %2, %22 : vector<96x256xf32>
    %24 = vector.broadcast %21 : vector<1x256xf32> to vector<96x256xf32>
    %25 = arith.addf %23, %24 : vector<96x256xf32>
    %26 = vector.shape_cast %25 : vector<96x256xf32> to vector<2x48x256xf32>
    %27 = vector.shape_cast %26 : vector<2x48x256xf32> to vector<32x3x256xf32>
    %cst_12 = arith.constant dense<0xFF800000> : vector<32x256xf32>
    %28 = vector.multi_reduction <maximumf>, %27, %cst_12 [1] : vector<32x3x256xf32> to vector<32x256xf32>
    %cst_13 = arith.constant 0.000000e+00 : f32
    %29 = vector.broadcast %cst_13 : f32 to vector<32x256xf32>
    %30 = arith.maximumf %28, %29 : vector<32x256xf32>
    %c0_14 = arith.constant 0 : index
    %c0_15 = arith.constant 0 : index
    %31 = vector.load %arg4[%c0_14, %c0_15] : memref<32x256xf32, #tpu.memory_space<vmem>>, vector<32x256xf32>
    tpu.vector_store %arg4[%c0_14, %c0_15], %30 {strides = array<i32>} : memref<32x256xf32, #tpu.memory_space<vmem>>, vector<32x256xf32>,
    return
  }
}

</mosaic_0001>

<bundles_post_ra>
// kernel: tpu_custom_call.1
= control target key start
LH: loop header
LB: loop body
LE: loop exit
PB: predicated region body
PF: predicated region fallthrough
CT: control target
= control target key end

     0   :  { %vm77_vm0 = vcmask 1043456   ;;  %v2873_v5 = vmov 0.0   ;;  %s4164_s0 = inlined_call_operand.vmem [shape: f32[96,36], index: 0, kind: input, shape index: {}]   ;;  %s4165_s1 = inlined_call_operand.vmem [shape: f32[36,256], index: 1, kind: input, shape index: {}]   ;;  %s4166_s2 = inlined_call_operand.vmem [shape: f32[1,256], index: 2, kind: input, shape index: {}]   ;;  %s4167_s3 = inlined_call_operand.vmem [shape: f32[1,256], index: 3, kind: input, shape index: {}]   ;;  %s4168_s4 = inlined_call_operand.hbm [shape: f32[32,256], index: 4, kind: output, shape index: {}]  }
   0x1   :  { %v39_v0 = vld [vmem:[%s4165_s1 + $0x48] sm:$0xf]  ;;  %v38_v1 = vld [vmem:[%s4165_s1 + $0x40] sm:$0xf]  ;;  %v37_v2 = vld [vmem:[%s4165_s1 + $0x38] sm:$0xff]  ;;  %148 = vmatprep.mubr.f32.mxu0 %v2873_v5 }
   0x2   :  { %2810 = vmatprep.subr.msk.mxu0 %vm77_vm0, %v39_v0  ;;  %v36_v3 = vld [vmem:[%s4165_s1 + $0x30] sm:$0xff]  ;;  %2832 = vmatprep.subr.msk.mxu1 %vm77_vm0, %v39_v0  ;;  %v35_v4 = vld [vmem:[%s4165_s1 + $0x28] sm:$0xff]  ;;  %v34_v6 = vld [vmem:[%s4165_s1 + $0x20] sm:$0xff] }
   0x3   :  { %2811 = vmatpush1.msk.msra.mxu0 %vm77_vm0, %v38_v1  ;;  %2837 = vmatpush1.msk.msra.mxu1 %vm77_vm0, %v38_v1  ;;  %v33_v7 = vld [vmem:[%s4165_s1 + $0x18] sm:$0xff]  ;;  %v32_v8 = vld [vmem:[%s4165_s1 + $0x10] sm:$0xff]  ;;  %v31_v9 = vld [vmem:[%s4165_s1 + $0x8] sm:$0xff] }
   0x4   :  { %108 = vmatprep.subr.mxu0 %v37_v2  ;;  %2833 = vmatprep.subr.mxu1 %v37_v2  ;;  %v30_v10 = vld [vmem:[%s4165_s1] sm:$0xff] }
   0x5   :  { %109 = vmatpush1.msra.mxu0 %v36_v3  ;;  %2838 = vmatpush1.msra.mxu1 %v36_v3 }
   0x6   :  { %110 = vmatprep.subr.mxu0 %v35_v4  ;;  %2834 = vmatprep.subr.mxu1 %v35_v4 }
   0x7   :  { %111 = vmatpush1.msra.mxu0 %v34_v6  ;;  %2839 = vmatpush1.msra.mxu1 %v34_v6 }
   0x8   :  { %112 = vmatprep.subr.mxu0 %v33_v7 }
   0x9   :  { %9 = vsyncpa [#allocation3], 0  ;;  %113 = vmatpush1.msra.mxu0 %v32_v8  ;;  %v18_v11 = vld [vmem:[%s4164_s0] sm:$0xff]  ;;  %vm40_vm1 = vcmask 293888   ;;  %2835 = vmatprep.subr.mxu1 %v33_v7  ;;  %v24_v12 = vld [vmem:[%s4164_s0 + $0x30] sm:$0xff]  ;;  %vm2138_vm2 = vcmask 1042432  }
   0xa   :  { %114 = vmatprep.subr.mxu0 %v31_v9  ;;  %2840 = vmatpush1.msra.mxu1 %v32_v8  ;;  %v19_v13 = vld [vmem:[%s4164_s0 + $0x8] sm:$0xff]  ;;  %v25_v14 = vld [vmem:[%s4164_s0 + $0x38] sm:$0xff]  ;;  %v20_v15 = vld [vmem:[%s4164_s0 + $0x10] sm:$0xff]  ;;  %vm2715_vm3 = vcmask 1041409   ;;  %vm2717_vm4 = vcmask 1042434   ;;  %vm2719_vm5 = vcmask 1043459  }
   0xb   :  { %115 = vmatpush1.msra.mxu0 %v30_v10  ;;  %2836 = vmatprep.subr.mxu1 %v31_v9  ;;  %v26_v16 = vld [vmem:[%s4164_s0 + $0x40] sm:$0xff]  ;;  %v21_v17 = vld [vmem:[%s4164_s0 + $0x18] sm:$0xff]  ;;  %v27_v18 = vld [vmem:[%s4164_s0 + $0x48] sm:$0xff]  ;;  %vm2721_vm6 = vcmask 1044484   ;;  %vm2723_vm7 = vcmask 1045509   ;;  %vm2725_vm8 = vcmask 1046534  }
   0xc   :  { %2812 = vmatmul.mubr.msk.f32.vlgmr.msra.gmra.mxu0 %vm40_vm1, %v18_v11  ;;  %2841 = vmatpush1.msra.mxu1 %v30_v10  ;;  %v22_v19 = vld [vmem:[%s4164_s0 + $0x20] sm:$0xff]  ;;  %v28_v20 = vld [vmem:[%s4164_s0 + $0x50] sm:$0xff]  ;;  %v23_v21 = vld [vmem:[%s4164_s0 + $0x28] sm:$0xff]  ;;  %vm2727_vm9 = vcmask 1047559  }
   0xd   :  { %154 = vmatprep.mubr.f32.mxu0 %v2873_v5  ;;  %184 = vmatprep.mubr.f32.mxu1 %v2873_v5  ;;  %v29_v22 = vld [vmem:[%s4164_s0 + $0x58] sm:$0xff] }
   0xe   :  { %2818 = vmatmul.mubr.msk.f32.vlgmr.msra.gmra.mxu1 %vm40_vm1, %v24_v12 }
   0xf   :  { %190 = vmatprep.mubr.f32.mxu1 %v2873_v5 }
  0x10   :  { %2813 = vmatmul.mubr.msk.f32.gmra.mxu0 %vm40_vm1, %v19_v13 }
  0x11   :  { %160 = vmatprep.mubr.f32.mxu0 %v2873_v5 }
  0x12   :  { %2819 = vmatmul.mubr.msk.f32.gmra.mxu1 %vm40_vm1, %v25_v14 }
  0x13   :  { %196 = vmatprep.mubr.f32.mxu1 %v2873_v5 }
  0x14   :  { %2814 = vmatmul.mubr.msk.f32.gmra.mxu0 %vm40_vm1, %v20_v15 }
  0x15   :  { %166 = vmatprep.mubr.f32.mxu0 %v2873_v5 }
  0x16   :  { %2820 = vmatmul.mubr.msk.f32.gmra.mxu1 %vm40_vm1, %v26_v16 }
  0x17   :  { %202 = vmatprep.mubr.f32.mxu1 %v2873_v5 }
  0x18   :  { %2815 = vmatmul.mubr.msk.f32.gmra.mxu0 %vm40_vm1, %v21_v17 }
  0x19   :  { %172 = vmatprep.mubr.f32.mxu0 %v2873_v5 }
  0x1a   :  { %2821 = vmatmul.mubr.msk.f32.gmra.mxu1 %vm40_vm1, %v27_v18 }
  0x1b   :  { %208 = vmatprep.mubr.f32.mxu1 %v2873_v5 }
  0x1c   :  { %2816 = vmatmul.mubr.msk.f32.gmra.mxu0 %vm40_vm1, %v22_v19 }
  0x1d   :  { %178 = vmatprep.mubr.f32.mxu0 %v2873_v5 }
  0x1e   :  { %2822 = vmatmul.mubr.msk.f32.gmra.mxu1 %vm40_vm1, %v28_v20 }
  0x1f   :  { %214 = vmatprep.mubr.f32.mxu1 %v2873_v5 }
  0x20   :  { %2817 = vmatmul.mubr.msk.f32.gmra.mxu0 %vm40_vm1, %v23_v21 }
  0x22   :  { %2823 = vmatmul.mubr.msk.f32.gmra.mxu1 %vm40_vm1, %v29_v22 }
  0xcc   :  { %v2981_v23 = vpop.f32.mrf.mxu0 }
  0xce   :  { %v2983_v24 = vpop.f32.mrf.mxu0  ;;  %v2985_v25 = vpop.f32.mrf.mxu1 }
  0xd0   :  { %v2987_v26 = vpop.f32.mrf.mxu0  ;;  %v2989_v27 = vpop.f32.mrf.mxu1 }
  0xd1   :  { %v221_v36 = vadd.f32 %v2987_v26, %v2981_v23 }
  0xd2   :  { %v2991_v28 = vpop.f32.mrf.mxu0  ;;  %v2993_v29 = vpop.f32.mrf.mxu1 }
  0xd3   :  { %v238_v39 = vadd.f32 %v2991_v28, %v2983_v24 }
  0xd4   :  { %v2995_v30 = vpop.f32.mrf.mxu0  ;;  %v2997_v31 = vpop.f32.mrf.mxu1 }
  0xd5   :  { %v222_v40 = vadd.f32 %v221_v36, %v2995_v30 }
  0xd6   :  { %v2999_v32 = vpop.f32.mrf.mxu0  ;;  %v3001_v33 = vpop.f32.mrf.mxu1 }
  0xd7   :  { %v239_v42 = vadd.f32 %v238_v39, %v2999_v32 }
  0xd8   :  { %v3003_v34 = vpop.f32.mrf.mxu0  ;;  %v3005_v35 = vpop.f32.mrf.mxu1 }
  0xd9   :  { %v223_v43 = vadd.f32 %v222_v40, %v3003_v34 }
  0xda   :  { %v3009_v37 = vpop.f32.mrf.mxu0  ;;  %v3011_v38 = vpop.f32.mrf.mxu1 }
  0xdb   :  { %v240_v46 = vadd.f32 %v239_v42, %v3009_v37 }
  0xdc   :  { %v3016_v41 = vpop.f32.mrf.mxu0  ;;  %v3022_v45 = vpop.f32.mrf.mxu1 }
  0xdd   :  { %v224_v47 = vadd.f32 %v223_v43, %v3016_v41 }
  0xde   :  { %v3020_v44 = vpop.f32.mrf.mxu0  ;;  %v3032_v52 = vpop.f32.mrf.mxu1 }
  0xdf   :  { %v241_v49 = vadd.f32 %v240_v46, %v3020_v44 }
  0xe0   :  { %v3026_v48 = vpop.f32.mrf.mxu0  ;;  %v3038_v57 = vpop.f32.mrf.mxu1 }
  0xe1   :  { %v225_v50 = vadd.f32 %v224_v47, %v3026_v48 }
  0xe2   :  { %v3030_v51 = vpop.f32.mrf.mxu0  ;;  %v3044_v62 = vpop.f32.mrf.mxu1 }
  0xe3   :  { %v226_v53 = vadd.f32 %v225_v50, %v2985_v25  ;;  %v242_v54 = vadd.f32 %v241_v49, %v3030_v51 }
  0xe4   :  { %v3050_v3 = vpop.f32.mrf.mxu1 }
  0xe5   :  { %v243_v55 = vadd.f32 %v242_v54, %v2989_v27  ;;  %v227_v56 = vadd.f32 %v226_v53, %v2993_v29 }
  0xe7   :  { %v244_v58 = vadd.f32 %v243_v55, %v2997_v31  ;;  %v228_v59 = vadd.f32 %v227_v56, %v3001_v33 }
  0xe9   :  { %v229_v60 = vadd.f32 %v228_v59, %v3011_v38  ;;  %v245_v61 = vadd.f32 %v244_v58, %v3005_v35 }
  0xeb   :  { %v246_v63 = vadd.f32 %v245_v61, %v3022_v45  ;;  %v230_v0 = vadd.f32 %v229_v60, %v3032_v52 }
  0xed   :  { %v247_v1 = vadd.f32 %v246_v63, %v3038_v57  ;;  %v231_v2 = vadd.f32 %v230_v0, %v3044_v62 }
  0xef   :  { %v232_v4 = vrot.slane %v231_v2, 4  ;;  %v248_v5 = vadd.f32 %v247_v1, %v3050_v3 }
  0xf1   :  { %v233_v6 = vadd.f32 %v232_v4, %v231_v2  ;;  %v249_v7 = vrot.slane %v248_v5, 4 }
  0xf3   :  { %v234_v8 = vrot.slane %v233_v6, 2  ;;  %v250_v9 = vadd.f32 %v249_v7, %v248_v5 }
  0xf5   :  { %v235_v10 = vadd.f32 %v234_v8, %v233_v6  ;;  %v251_v11 = vrot.slane %v250_v9, 2 }
  0xf7   :  { %v236_v12 = vrot.slane %v235_v10, 1  ;;  %v252_v13 = vadd.f32 %v251_v11, %v250_v9 }
  0xf9   :  { %v237_v14 = vadd.f32 %v236_v12, %v235_v10  ;;  %v253_v16 = vrot.slane %v252_v13, 1 }
  0xfb   :  { %v3053_v15 = vmul.f32 0.010416667, %v237_v14  ;;  %v254_v20 = vadd.f32 %v253_v16, %v252_v13 }
  0xfd   :  { %v258_v17 = vsub.f32 %v2981_v23, %v3053_v15  ;;  %v260_v18 = vsub.f32 %v2987_v26, %v3053_v15  ;;  %v262_v19 = vsub.f32 %v2995_v30, %v3053_v15  ;;  %v264_v36 = vsub.f32 %v3003_v34, %v3053_v15 }
  0xfe   :  { %v266_v39 = vsub.f32 %v3016_v41, %v3053_v15  ;;  %v3065_v43 = vmul.f32 0.010416667, %v254_v20  ;;  %v268_v46 = vsub.f32 %v3026_v48, %v3053_v15  ;;  %v270_v54 = vsub.f32 %v2985_v25, %v3053_v15 }
  0xff   :  { %v282_v21 = vmul.f32 %v258_v17, %v258_v17  ;;  %v284_v22 = vmul.f32 %v260_v18, %v260_v18  ;;  %v286_v40 = vmul.f32 %v262_v19, %v262_v19  ;;  %v288_v47 = vmul.f32 %v264_v36, %v264_v36 }
 0x100   :  { %v259_v50 = vsub.f32 %v2983_v24, %v3065_v43  ;;  %v261_v53 = vsub.f32 %v2991_v28, %v3065_v43  ;;  %v290_v55 = vmul.f32 %v266_v39, %v266_v39  ;;  %v263_v58 = vsub.f32 %v2999_v32, %v3065_v43 }
 0x101   :  { %v306_v42 = vadd.f32 %v284_v22, %v282_v21  ;;  %v272_v61 = vsub.f32 %v2993_v29, %v3053_v15  ;;  %v292_v63 = vmul.f32 %v268_v46, %v268_v46  ;;  %v265_v1 = vsub.f32 %v3009_v37, %v3065_v43 }
 0x102   :  { %v283_v59 = vmul.f32 %v259_v50, %v259_v50  ;;  %v285_v60 = vmul.f32 %v261_v53, %v261_v53  ;;  %v274_v2 = vsub.f32 %v3001_v33, %v3053_v15  ;;  %v294_v4 = vmul.f32 %v270_v54, %v270_v54 }
 0x103   :  { %v307_v49 = vadd.f32 %v306_v42, %v286_v40  ;;  %v267_v6 = vsub.f32 %v3020_v44, %v3065_v43  ;;  %v287_v7 = vmul.f32 %v263_v58, %v263_v58  ;;  %v276_v9 = vsub.f32 %v3011_v38, %v3053_v15 }
 0x104   :  { %v323_v8 = vadd.f32 %v285_v60, %v283_v59  ;;  %v296_v10 = vmul.f32 %v272_v61, %v272_v61  ;;  %v269_v12 = vsub.f32 %v3030_v51, %v3065_v43  ;;  %v289_v13 = vmul.f32 %v265_v1, %v265_v1 }
 0x105   :  { %v308_v56 = vadd.f32 %v307_v49, %v288_v47  ;;  %v278_v16 = vsub.f32 %v3032_v52, %v3053_v15  ;;  %v298_v17 = vmul.f32 %v274_v2, %v274_v2  ;;  %v271_v19 = vsub.f32 %v2989_v27, %v3065_v43 }
 0x106   :  { %v324_v14 = vadd.f32 %v323_v8, %v287_v7  ;;  %v291_v20 = vmul.f32 %v267_v6, %v267_v6  ;;  %v280_v22 = vsub.f32 %v3044_v62, %v3053_v15  ;;  %v300_v36 = vmul.f32 %v276_v9, %v276_v9 }
 0x107   :  { %v309_v0 = vadd.f32 %v308_v56, %v290_v55  ;;  %v273_v40 = vsub.f32 %v2997_v31, %v3065_v43  ;;  %v293_v42 = vmul.f32 %v269_v12, %v269_v12  ;;  %v302_v47 = vmul.f32 %v278_v16, %v278_v16 }
 0x108   :  { %v325_v21 = vadd.f32 %v324_v14, %v289_v13  ;;  %v275_v50 = vsub.f32 %v3005_v35, %v3065_v43  ;;  %v295_v53 = vmul.f32 %v271_v19, %v271_v19  ;;  %v304_v55 = vmul.f32 %v280_v22, %v280_v22 }
 0x109   :  { %v310_v5 = vadd.f32 %v309_v0, %v292_v63  ;;  %v277_v58 = vsub.f32 %v3022_v45, %v3065_v43  ;;  %v297_v59 = vmul.f32 %v273_v40, %v273_v40  ;;  %v279_v63 = vsub.f32 %v3038_v57, %v3065_v43 }
 0x10a   :  { %v326_v46 = vadd.f32 %v325_v21, %v291_v20  ;;  %v299_v0 = vmul.f32 %v275_v50, %v275_v50  ;;  %v353_v50 = vlaneseq }
 0x10b   :  { %v311_v11 = vadd.f32 %v310_v5, %v294_v4  ;;  %v281_v4 = vsub.f32 %v3050_v3, %v3065_v43  ;;  %v301_v5 = vmul.f32 %v277_v58, %v277_v58  ;;  %v303_v8 = vmul.f32 %v279_v63, %v279_v63 }
 0x10c   :  { %v327_v54 = vadd.f32 %v326_v46, %v293_v42 }
 0x10d   :  { %v312_v18 = vadd.f32 %v311_v11, %v296_v10  ;;  %v305_v11 = vmul.f32 %v281_v4, %v281_v4 }
 0x10e   :  { %v328_v60 = vadd.f32 %v327_v54, %v295_v53  ;;  %v354_v54 = vshrl.u32 %v353_v50, 7 }
 0x10f   :  { %v313_v39 = vadd.f32 %v312_v18, %v298_v17 }
 0x110   :  { %v329_v1 = vadd.f32 %v328_v60, %v297_v59 }
 0x111   :  { %v314_v49 = vadd.f32 %v313_v39, %v300_v36 }
 0x112   :  { %v330_v6 = vadd.f32 %v329_v1, %v299_v0  ;;  %v370_v0 = vsub.s32 0, %v354_v54  ;;  %v374_v1 = vsub.s32 1, %v354_v54 }
 0x113   :  { %v315_v56 = vadd.f32 %v314_v49, %v302_v47  ;;  %v2874_v47 = vmov 1966171168  }
 0x114   :  { %v331_v9 = vadd.f32 %v330_v6, %v301_v5  ;;  %v351_v49 = vunpack.c.l.s4 %v2874_v47 }
 0x115   :  { %v316_v61 = vadd.f32 %v315_v56, %v304_v55 }
 0x116   :  { %v332_v12 = vadd.f32 %v331_v9, %v303_v8  ;;  %v352_v53 = vunpack.c.0.s8 %v351_v49 }
 0x117   :  { %v317_v2 = vrot.slane %v316_v61, 4 }
 0x118   :  { %v333_v14 = vadd.f32 %v332_v12, %v305_v11  ;;  %v3105_v56 = vsub.s32 %v352_v53, %v354_v54 }
 0x119   :  { %v318_v7 = vadd.f32 %v317_v2, %v316_v61  ;;  %v342_v61 = vld [vmem:[%s4166_s2] sm:$0x3]  ;;  %s2875_s2 = smov [#allocation2]  }
 0x11a   :  { %v334_v17 = vrot.slane %v333_v14, 4 }
 0x11b   :  { %v319_v10 = vrot.slane %v318_v7, 2 }
 0x11c   :  { %v335_v18 = vadd.f32 %v334_v17, %v333_v14 }
 0x11d   :  { %v320_v13 = vadd.f32 %v319_v10, %v318_v7  ;;  %v366_v10 = vld [vmem:[%s4167_s3] sm:$0x3]  ;;  %s2799_s3 = sshll.u32 %s2875_s2, 4  ;;  %s2800_s3 = int_to_ptr.vmem [resolvable:$true] %s2799_s3 }
 0x11e   :  { %v336_v20 = vrot.slane %v335_v18, 2  ;;  %s2851_s9 = scalar_lea.vmem %s2800_s3, 1024  ;;  %p2856_p1 = scmp.lt.s32.totalorder %s2800_s3, %s2800_s3 }
 0x11f   :  { %v321_v16 = vrot.slane %v320_v13, 1  ;;  %p2852_p0 = scmp.ne.s32.totalorder %s2800_s3, %s2851_s9  ;;  %p2857_p2 = scmp.lt.s32.totalorder %s2851_s9, %s2851_s9 }
 0x120   :  { %v337_v21 = vadd.f32 %v336_v20, %v335_v18 }
 0x121   :  { %v322_v19 = vadd.f32 %v321_v16, %v320_v13  ;;  %p2858_p3 = por %p2857_p2, %p2856_p1 }
 0x122   :  { %v338_v36 = vrot.slane %v337_v21, 1 }
 0x123   :  { %v340_v22 = vmul.f32 0.010416667, %v322_v19  ;;  %p2859_p4 = pnand %p2858_p3, %p2852_p0 }
 0x124   :  { %v339_v39 = vadd.f32 %v338_v36, %v337_v21 }
 0x125   :  { %v343_v40 = vadd.f32 1e-05, %v340_v22 }
 0x126   :  { %v341_v42 = vmul.f32 0.010416667, %v339_v39 }
 0x127   :  { %2847 = vrsqrt.f32 %v343_v40 }
 0x128   :  { %v344_v46 = vadd.f32 1e-05, %v341_v42 }
 0x12a   :  { %2849 = vrsqrt.f32 %v344_v46 }
 0x134   :  { %v2848_v55 = vpop.eup %2847 }
 0x137   :  { %v2850_v58 = vpop.eup %2849 }
 0x138   :  { %v349_v59 = vcombine.low %v2848_v55, %v2850_v58 }
 0x13a   :  { %v356_v60 = vrot.slane %v349_v59, %v3105_v56 }
 0x13c   :  { %v363_v63 = vrot.slane %v356_v60, %v3105_v56 }
 0x13e   :  { %v365_v2 = vmul.f32 %v363_v63, %v342_v61 }
 0x140   :  { %v371_v4 = vrot.slane %v365_v2, %v370_v0  ;;  %v375_v5 = vrot.slane %v365_v2, %v374_v1 }
 0x142   :  { %v378_v6 = vmul.f32 %v371_v4, %v3053_v15  ;;  %v379_v7 = vmul.f32 %v375_v5, %v3065_v43  ;;  %v417_v11 = vmul.f32 %v371_v4, %v3011_v38  ;;  %v418_v12 = vmul.f32 %v375_v5, %v3022_v45 }
 0x143   :  { %v419_v13 = vmul.f32 %v371_v4, %v3032_v52  ;;  %v420_v14 = vmul.f32 %v375_v5, %v3038_v57  ;;  %v421_v15 = vmul.f32 %v371_v4, %v3044_v62  ;;  %v422_v43 = vmul.f32 %v375_v5, %v3050_v3 }
 0x144   :  { %v382_v8 = vcombine.low %v378_v6, %v379_v7  ;;  %v399_v17 = vmul.f32 %v371_v4, %v2981_v23  ;;  %v400_v18 = vmul.f32 %v375_v5, %v2983_v24  ;;  %v401_v19 = vmul.f32 %v371_v4, %v2987_v26 }
 0x145   :  { %v402_v38 = vmul.f32 %v375_v5, %v2991_v28  ;;  %v403_v45 = vmul.f32 %v371_v4, %v2995_v30  ;;  %v404_v52 = vmul.f32 %v375_v5, %v2999_v32  ;;  %v3132_v57 = vmul.f32 %v371_v4, %v3003_v34 }
 0x146   :  { %v389_v9 = vrot.slane %v382_v8, %v3105_v56  ;;  %v3135_v62 = vmul.f32 %v375_v5, %v3009_v37  ;;  %v3138_v3 = vmul.f32 %v371_v4, %v3016_v41  ;;  %v3141_v23 = vmul.f32 %v375_v5, %v3020_v44 }
 0x147   :  { %v3144_v24 = vmul.f32 %v371_v4, %v3026_v48  ;;  %v3147_v26 = vmul.f32 %v375_v5, %v3030_v51  ;;  %v3154_v32 = vmul.f32 %v371_v4, %v2985_v25  ;;  %v3157_v34 = vmul.f32 %v375_v5, %v2989_v27 }
 0x148   :  { %v396_v16 = vrot.slane %v389_v9, %v3105_v56  ;;  %v3160_v37 = vmul.f32 %v371_v4, %v2993_v29  ;;  %v3163_v41 = vmul.f32 %v375_v5, %v2997_v31  ;;  %v3166_v44 = vmul.f32 %v371_v4, %v3001_v33 }
 0x149   :  { %v3169_v48 = vmul.f32 %v375_v5, %v3005_v35 }
 0x14a   :  { %v398_v20 = vsub.f32 %v366_v10, %v396_v16 }
 0x14c   :  { %v3149_v28 = vrot.slane %v398_v20, %v370_v0  ;;  %v3151_v30 = vrot.slane %v398_v20, %v374_v1 }
 0x14e   :  { %v452_v51 = vadd.f32 %v3149_v28, %v417_v11  ;;  %v453_v25 = vadd.f32 %v3151_v30, %v418_v12  ;;  %v454_v21 = vadd.f32 %v3149_v28, %v419_v13  ;;  %v455_v27 = vadd.f32 %v3151_v30, %v420_v14 }
 0x14f   :  { %v456_v29 = vadd.f32 %v3149_v28, %v421_v15  ;;  %v457_v22 = vadd.f32 %v3151_v30, %v422_v43  ;;  %v3178_v31 = vadd.f32 %v3149_v28, %v399_v17  ;;  %v3181_v33 = vadd.f32 %v3151_v30, %v400_v18 }
 0x150   :  { %v932_v35 = vcombine.low %v452_v51, %v453_v25  ;;  %v933_v36 = vcombine.high %v452_v51, %v453_v25  ;;  %v982_v39 = vcombine.low %v454_v21, %v455_v27  ;;  %v983_v40 = vcombine.high %v454_v21, %v455_v27 }
 0x151   :  { %v1032_v42 = vcombine.low %v456_v29, %v457_v22  ;;  %v1033_v46 = vcombine.high %v456_v29, %v457_v22  ;;  %v3184_v47 = vadd.f32 %v3149_v28, %v401_v19  ;;  %v3187_v49 = vadd.f32 %v3151_v30, %v402_v38 }
 0x152   :  { %v940_v50 = vrot.slane %v932_v35, %v3105_v56  ;;  %v947_v53 = vrot.slane %v933_v36, %v3105_v56  ;;  %v990_v54 = vrot.slane %v982_v39, %v3105_v56  ;;  %v997_v55 = vrot.slane %v983_v40, %v3105_v56 }
 0x153   :  { %v1040_v58 = vrot.slane %v1032_v42, %v3105_v56  ;;  %v1047_v59 = vrot.slane %v1033_v46, %v3105_v56  ;;  %v3196_v60 = vadd.f32 %v3149_v28, %v403_v45  ;;  %v3199_v61 = vadd.f32 %v3151_v30, %v404_v52 }
 0x154   :  { %v948_v63 = vcombine.high %v940_v50, %v940_v50  ;;  %v949_v0 = vcombine.high %v947_v53, %v947_v53  ;;  %v956_v1 = vrot.slane %v940_v50, %v3105_v56  ;;  %v963_v2 = vrot.slane %v947_v53, %v3105_v56 }
 0x155   :  { %v998_v4 = vcombine.high %v990_v54, %v990_v54  ;;  %v999_v5 = vcombine.high %v997_v55, %v997_v55  ;;  %v1006_v6 = vrot.slane %v990_v54, %v3105_v56  ;;  %v1013_v7 = vrot.slane %v997_v55, %v3105_v56 }
 0x156   :  { %v970_v8 = vrot.slane %v948_v63, %v3105_v56  ;;  %v977_v9 = vrot.slane %v949_v0, %v3105_v56  ;;  %v978_v10 = vcombine.high %v956_v1, %v956_v1  ;;  %v1048_v11 = vcombine.high %v1040_v58, %v1040_v58 }
 0x157   :  { %v1020_v12 = vrot.slane %v998_v4, %v3105_v56  ;;  %v1027_v13 = vrot.slane %v999_v5, %v3105_v56  ;;  %v1028_v14 = vcombine.high %v1006_v6, %v1006_v6  ;;  %v1029_v16 = vcombine.high %v1013_v7, %v1013_v7 }
 0x158   :  { %v980_v15 = vcombine.high %v970_v8, %v970_v8  ;;  %v1049_v43 = vcombine.high %v1047_v59, %v1047_v59  ;;  %v1056_v17 = vrot.slane %v1040_v58, %v3105_v56  ;;  %v1063_v18 = vrot.slane %v1047_v59, %v3105_v56 }
 0x159   :  { %v1030_v19 = vcombine.high %v1020_v12, %v1020_v12  ;;  %v1031_v38 = vcombine.high %v1027_v13, %v1027_v13  ;;  %v1070_v45 = vrot.slane %v1048_v11, %v3105_v56  ;;  %v1826_v20 = vcombine.low %v956_v1, %v970_v8 }
 0x15a   :  { %v1077_v52 = vrot.slane %v1049_v43, %v3105_v56  ;;  %v1079_v51 = vcombine.high %v1063_v18, %v1063_v18  ;;  %v1840_v25 = vrot.slane %v978_v10, %v3105_v56  ;;  %v1857_v21 = vcombine.low %v980_v15, %v963_v2 }
 0x15b   :  { %v1833_v27 = vrot.slane %v1826_v20, %v3105_v56  ;;  %v1871_v29 = vrot.slane %v977_v9, %v3105_v56  ;;  %v2830_v22 = vcombine.high %v963_v2, %v977_v9  ;;  %v1902_v35 = vrot.slane %v1006_v6, %v3105_v56 }
 0x15c   :  { %v1081_v36 = vcombine.high %v1077_v52, %v1077_v52  ;;  %v1864_v39 = vrot.slane %v1857_v21, %v3105_v56  ;;  %v1919_v40 = vcombine.low %v1020_v12, %v1028_v14  ;;  %v1933_v42 = vrot.slane %v1030_v19, %v3105_v56 }
 0x15d   :  { %v1841_v46 = vcombine.low %v1833_v27, %v1840_v25  ;;  %v1842_v50 = vcombine.high %v1833_v27, %v1840_v25  ;;  %v1895_v53 = vrot.slane %v2830_v22, %v3105_v56  ;;  %v1950_v54 = vcombine.low %v1013_v7, %v1027_v13 }
 0x15e   :  { %v1872_v55 = vcombine.low %v1864_v39, %v1871_v29  ;;  %v1873_v58 = vcombine.high %v1864_v39, %v1871_v29  ;;  %v1926_v59 = vrot.slane %v1919_v40, %v3105_v56  ;;  %v1964_v63 = vrot.slane %v1029_v16, %v3105_v56 }
 0x15f   :  { %v1849_v0 = vrot.slane %v1841_v46, %v3105_v56  ;;  %v1856_v1 = vrot.slane %v1842_v50, %v3105_v56  ;;  %v1903_v2 = vcombine.low %v1895_v53, %v1902_v35  ;;  %v1904_v4 = vcombine.high %v1895_v53, %v1902_v35 }
 0x160   :  { %v1880_v5 = vrot.slane %v1872_v55, %v3105_v56  ;;  %v1887_v6 = vrot.slane %v1873_v58, %v3105_v56  ;;  %v1934_v8 = vcombine.low %v1926_v59, %v1933_v42  ;;  %v1935_v9 = vcombine.high %v1926_v59, %v1933_v42 }
 0x161   :  { %v1911_v7 = vrot.slane %v1903_v2, %v3105_v56  ;;  %v1918_v10 = vrot.slane %v1904_v4, %v3105_v56  ;;  %v1957_v11 = vrot.slane %v1950_v54, %v3105_v56  ;;  %v1981_v12 = vcombine.low %v1031_v38, %v1056_v17 }
 0x162   :  { %v1942_v13 = vrot.slane %v1934_v8, %v3105_v56  ;;  %v1949_v14 = vrot.slane %v1935_v9, %v3105_v56  ;;  %v1995_v16 = vrot.slane %v1070_v45, %v3105_v56  ;;  %v2831_v15 = vcombine.high %v1056_v17, %v1070_v45 }
 0x163   :  { %v1965_v43 = vcombine.low %v1957_v11, %v1964_v63  ;;  %v1966_v19 = vcombine.high %v1957_v11, %v1964_v63  ;;  %v1988_v20 = vrot.slane %v1981_v12, %v3105_v56  ;;  %v2026_v25 = vrot.slane %v1063_v18, %v3105_v56 }
 0x164   :  { %v2019_v21 = vrot.slane %v2831_v15, %v3105_v56  ;;  %v2043_v27 = vcombine.low %v1077_v52, %v1079_v51  ;;  %v2057_v29 = vrot.slane %v1081_v36, %v3105_v56  ;;  %v2475_v38 = vsel %vm2138_vm2, %v1849_v0, -inf }
 0x165   :  { %v1973_v22 = vrot.slane %v1965_v43, %v3105_v56  ;;  %v3239_v35 = vrot.slane %v1966_v19, %v3105_v56  ;;  %v1996_v39 = vcombine.low %v1988_v20, %v1995_v16  ;;  %v1997_v17 = vcombine.high %v1988_v20, %v1995_v16 }
 0x166   :  { %v2027_v45 = vcombine.low %v2019_v21, %v2026_v25  ;;  %v2028_v40 = vcombine.high %v2019_v21, %v2026_v25  ;;  %v2050_v42 = vrot.slane %v2043_v27, %v3105_v56  ;;  %v2476_v46 = vrot.slane %v2475_v38, 4 }
 0x167   :  { %v2004_v18 = vrot.slane %v1996_v39, %v3105_v56  ;;  %v3244_v52 = vrot.slane %v1997_v17, %v3105_v56  ;;  %v2482_v51 = vsel %vm2138_vm2, %v1856_v1, -inf  ;;  %v2489_v36 = vsel %vm2138_vm2, %v1880_v5, -inf }
 0x168   :  { %v3249_v50 = vrot.slane %v2027_v45, %v3105_v56  ;;  %v3252_v53 = vrot.slane %v2028_v40, %v3105_v56  ;;  %v2058_v54 = vcombine.low %v2050_v42, %v2057_v29  ;;  %v2059_v55 = vcombine.high %v2050_v42, %v2057_v29 }
 0x169   :  { %v2477_v58 = vmax.f32 %v2475_v38, %v2476_v46  ;;  %v2483_v59 = vrot.slane %v2482_v51, 4  ;;  %v2490_v63 = vrot.slane %v2489_v36, 4  ;;  %v2496_v0 = vsel %vm2138_vm2, %v1887_v6, -inf }
 0x16a   :  { %v3256_v2 = vrot.slane %v2058_v54, %v3105_v56  ;;  %v3259_v1 = vrot.slane %v2059_v55, %v3105_v56  ;;  %v2497_v4 = vrot.slane %v2496_v0, 4  ;;  %v2503_v5 = vsel %vm2138_vm2, %v1911_v7, -inf }
 0x16b   :  { %v2478_v8 = vrot.slane %v2477_v58, 2  ;;  %v2484_v9 = vmax.f32 %v2482_v51, %v2483_v59  ;;  %v2491_v11 = vmax.f32 %v2489_v36, %v2490_v63  ;;  %v2504_v12 = vrot.slane %v2503_v5, 4 }
 0x16c   :  { %v2498_v16 = vmax.f32 %v2496_v0, %v2497_v4  ;;  %v2510_v15 = vsel %vm2138_vm2, %v1918_v10, -inf  ;;  %v2517_v43 = vsel %vm2138_vm2, %v1942_v13, -inf  ;;  %v2524_v6 = vsel %vm2138_vm2, %v1949_v14, -inf }
 0x16d   :  { %v2479_v19 = vmax.f32 %v2477_v58, %v2478_v8  ;;  %v2485_v20 = vrot.slane %v2484_v9, 2  ;;  %v2492_v25 = vrot.slane %v2491_v11, 2  ;;  %v2505_v21 = vmax.f32 %v2503_v5, %v2504_v12 }
 0x16e   :  { %v2499_v27 = vrot.slane %v2498_v16, 2  ;;  %v2511_v29 = vrot.slane %v2510_v15, 4  ;;  %v2518_v38 = vrot.slane %v2517_v43, 4  ;;  %v2525_v39 = vrot.slane %v2524_v6, 4 }
 0x16f   :  { %v2480_v7 = vrot.slane %v2479_v19, 1  ;;  %v2486_v17 = vmax.f32 %v2484_v9, %v2485_v20  ;;  %v2493_v45 = vmax.f32 %v2491_v11, %v2492_v25  ;;  %v2506_v40 = vrot.slane %v2505_v21, 2 }
 0x170   :  { %v2500_v42 = vmax.f32 %v2498_v16, %v2499_v27  ;;  %v2512_v46 = vmax.f32 %v2510_v15, %v2511_v29  ;;  %v2519_v51 = vmax.f32 %v2517_v43, %v2518_v38  ;;  %v2526_v10 = vmax.f32 %v2524_v6, %v2525_v39 }
 0x171   :  { %v3265_v36 = vmax.f32 %v2479_v19, %v2480_v7  ;;  %v2487_v13 = vrot.slane %v2486_v17, 1  ;;  %v2494_v14 = vrot.slane %v2493_v45, 1  ;;  %v2507_v54 = vmax.f32 %v2505_v21, %v2506_v40 }
 0x172   :  { %v2501_v55 = vrot.slane %v2500_v42, 1  ;;  %v2513_v58 = vrot.slane %v2512_v46, 2  ;;  %v2520_v59 = vrot.slane %v2519_v51, 2  ;;  %v2527_v63 = vrot.slane %v2526_v10, 2 }
 0x173   :  { %v3267_v0 = vmax.f32 %v2486_v17, %v2487_v13  ;;  %v3269_v4 = vmax.f32 %v2493_v45, %v2494_v14  ;;  %v2508_v5 = vrot.slane %v2507_v54, 1  ;;  %v2531_v8 = vsel %vm2138_vm2, %v1973_v22, -inf }
 0x174   :  { %v3272_v9 = vmax.f32 %v2500_v42, %v2501_v55  ;;  %v2514_v11 = vmax.f32 %v2512_v46, %v2513_v58  ;;  %v2521_v12 = vmax.f32 %v2519_v51, %v2520_v59  ;;  %v2528_v16 = vmax.f32 %v2526_v10, %v2527_v63 }
 0x175   :  { %v3274_v15 = vmax.f32 %v2507_v54, %v2508_v5  ;;  %v2532_v43 = vrot.slane %v2531_v8, 4  ;;  %v2538_v6 = vsel %vm2138_vm2, %v3239_v35, -inf  ;;  %v2545_v19 = vsel %vm2138_vm2, %v2004_v18, -inf }
 0x176   :  { %v2515_v20 = vrot.slane %v2514_v11, 1  ;;  %v2522_v25 = vrot.slane %v2521_v12, 1  ;;  %v2529_v21 = vrot.slane %v2528_v16, 1  ;;  %v2539_v27 = vrot.slane %v2538_v6, 4 }
 0x177   :  { %v2533_v29 = vmax.f32 %v2531_v8, %v2532_v43  ;;  %v2546_v38 = vrot.slane %v2545_v19, 4  ;;  %v2552_v22 = vsel %vm2138_vm2, %v3244_v52, -inf  ;;  %v2559_v39 = vsel %vm2138_vm2, %v3249_v50, -inf }
 0x178   :  { %v3283_v7 = vmax.f32 %v2514_v11, %v2515_v20  ;;  %v3285_v17 = vmax.f32 %v2521_v12, %v2522_v25  ;;  %v3287_v45 = vmax.f32 %v2528_v16, %v2529_v21  ;;  %v2540_v35 = vmax.f32 %v2538_v6, %v2539_v27 }
 0x179   :  { %v2534_v18 = vrot.slane %v2533_v29, 2  ;;  %v2547_v40 = vmax.f32 %v2545_v19, %v2546_v38  ;;  %v2553_v42 = vrot.slane %v2552_v22, 4  ;;  %v2560_v46 = vrot.slane %v2559_v39, 4 }
 0x17a   :  { %v2541_v51 = vrot.slane %v2540_v35, 2  ;;  %v2566_v10 = vsel %vm2138_vm2, %v3252_v53, -inf  ;;  %v2573_v52 = vsel %vm2138_vm2, %v3256_v2, -inf  ;;  %v2580_v50 = vsel %vm2138_vm2, %v3259_v1, -inf }
 0x17b   :  { %v2535_v13 = vmax.f32 %v2533_v29, %v2534_v18  ;;  %v2548_v14 = vrot.slane %v2547_v40, 2  ;;  %v2554_v54 = vmax.f32 %v2552_v22, %v2553_v42  ;;  %v2561_v55 = vmax.f32 %v2559_v39, %v2560_v46 }
 0x17c   :  { %v2542_v58 = vmax.f32 %v2540_v35, %v2541_v51  ;;  %v2567_v59 = vrot.slane %v2566_v10, 4  ;;  %v2574_v63 = vrot.slane %v2573_v52, 4  ;;  %v2581_v5 = vrot.slane %v2580_v50, 4 }
 0x17d   :  { %v2536_v8 = vrot.slane %v2535_v13, 1  ;;  %v2549_v11 = vmax.f32 %v2547_v40, %v2548_v14  ;;  %v2555_v12 = vrot.slane %v2554_v54, 2  ;;  %v2562_v16 = vrot.slane %v2561_v55, 2 }
 0x17e   :  { %v2543_v53 = vrot.slane %v2542_v58, 1  ;;  %v2568_v43 = vmax.f32 %v2566_v10, %v2567_v59  ;;  %v2575_v2 = vmax.f32 %v2573_v52, %v2574_v63  ;;  %v2582_v6 = vmax.f32 %v2580_v50, %v2581_v5 }
 0x17f   :  { %v2537_v1 = vmax.f32 %v2535_v13, %v2536_v8  ;;  %v2550_v19 = vrot.slane %v2549_v11, 1  ;;  %v2556_v20 = vmax.f32 %v2554_v54, %v2555_v12  ;;  %v2563_v25 = vmax.f32 %v2561_v55, %v2562_v16 }
 0x180   :  { %v2544_v21 = vmax.f32 %v2542_v58, %v2543_v53  ;;  %v2569_v27 = vrot.slane %v2568_v43, 2  ;;  %v2576_v29 = vrot.slane %v2575_v2, 2  ;;  %v2583_v38 = vrot.slane %v2582_v6, 2 }
 0x181   :  { %v2551_v22 = vmax.f32 %v2549_v11, %v2550_v19  ;;  %v2557_v39 = vrot.slane %v2556_v20, 1  ;;  %v2564_v35 = vrot.slane %v2563_v25, 1  ;;  %v2635_v18 = vmax.f32 %v3265_v36, 0.0 }
 0x182   :  { %v2570_v40 = vmax.f32 %v2568_v43, %v2569_v27  ;;  %v2577_v42 = vmax.f32 %v2575_v2, %v2576_v29  ;;  %v2584_v46 = vmax.f32 %v2582_v6, %v2583_v38  ;;  %v2636_v51 = vmax.f32 %v3267_v0, 0.0 }
 0x183   :  { %v2558_v10 = vmax.f32 %v2556_v20, %v2557_v39  ;;  %v2565_v52 = vmax.f32 %v2563_v25, %v2564_v35  ;;  %v2637_v50 = vmax.f32 %v3269_v4, 0.0  ;;  %v2638_v13 = vmax.f32 %v3272_v9, 0.0 }
 0x184   :  { %v2571_v14 = vrot.slane %v2570_v40, 1  ;;  %v2578_v54 = vrot.slane %v2577_v42, 1  ;;  %v2585_v55 = vrot.slane %v2584_v46, 1  ;;  %v2639_v58 = vmax.f32 %v3274_v15, 0.0 }
 0x185   :  { %v2640_v36 = vmax.f32 %v3283_v7, 0.0  ;;  %v2641_v59 = vmax.f32 %v3285_v17, 0.0  ;;  %v2642_v63 = vmax.f32 %v3287_v45, 0.0  ;;  %v2643_v5 = vmax.f32 %v2537_v1, 0.0 }
 0x186   :  { %v2572_v0 = vmax.f32 %v2570_v40, %v2571_v14  ;;  %v2579_v8 = vmax.f32 %v2577_v42, %v2578_v54  ;;  %v2586_v11 = vmax.f32 %v2584_v46, %v2585_v55  ;;  %v2644_v12 = vmax.f32 %v2544_v21, 0.0 }
 0x187   :  { %v2645_v16 = vmax.f32 %v2551_v22, 0.0  ;;  %v2646_v4 = vmax.f32 %v2558_v10, 0.0  ;;  %v2647_v53 = vmax.f32 %v2565_v52, 0.0  ;;  %v2764_v9 = vsel %vm2715_vm3, %v2637_v50, %v2635_v18 }
 0x188   :  { %v2648_v43 = vmax.f32 %v2572_v0, 0.0  ;;  %v2649_v2 = vmax.f32 %v2579_v8, 0.0  ;;  %v2650_v6 = vmax.f32 %v2586_v11, 0.0  ;;  %v2765_v15 = vsel %vm2717_vm4, %v2639_v58, %v2764_v9 }
 0x189   :  { %v2766_v7 = vsel %vm2719_vm5, %v2641_v59, %v2765_v15  ;;  %v2771_v17 = vsel %vm2715_vm3, %v2638_v13, %v2636_v51  ;;  %v440_v45 = vadd.f32 %v3149_v28, %v3132_v57  ;;  %v441_v1 = vadd.f32 %v3151_v30, %v3135_v62 }
 0x18a   :  { %v2767_v19 = vsel %vm2721_vm6, %v2643_v5, %v2766_v7  ;;  %v2772_v20 = vsel %vm2717_vm4, %v2640_v36, %v2771_v17  ;;  %v3315_v25 = vadd.f32 %v3149_v28, %v3138_v3  ;;  %v443_v21 = vadd.f32 %v3151_v30, %v3141_v23 }
 0x18b   :  { %v2768_v27 = vsel %vm2723_vm7, %v2645_v16, %v2767_v19  ;;  %v2773_v29 = vsel %vm2719_vm5, %v2642_v63, %v2772_v20  ;;  %v3323_v57 = vadd.f32 %v3149_v28, %v3144_v24  ;;  %v3327_v62 = vadd.f32 %v3151_v30, %v3147_v26 }
 0x18c   :  { %v2769_v38 = vsel %vm2725_vm8, %v2647_v53, %v2768_v27  ;;  %v2774_v3 = vsel %vm2721_vm6, %v2644_v12, %v2773_v29  ;;  %v3333_v22 = vadd.f32 %v3149_v28, %v3154_v32  ;;  %v3337_v23 = vadd.f32 %v3151_v30, %v3157_v34 }
 0x18d   :  { %v2770_v39 = vsel %vm2727_vm9, %v2649_v2, %v2769_v38  ;;  %v2775_v24 = vsel %vm2723_vm7, %v2646_v4, %v2774_v3  ;;  %v3343_v26 = vadd.f32 %v3149_v28, %v3160_v37  ;;  %v3347_v35 = vadd.f32 %v3151_v30, %v3163_v41 }
 0x18e   :  { %v2776_v18 = vsel %vm2725_vm8, %v2648_v43, %v2775_v24  ;;  %2792 = vst [vmem:[#allocation2 + $0x30] sm:$0xff] %v2770_v39  ;;  %v3352_v32 = vadd.f32 %v3149_v28, %v3166_v44  ;;  %v3356_v34 = vadd.f32 %v3151_v30, %v3169_v48  ;;  %v482_v40 = vcombine.low %v3178_v31, %v3181_v33 }
 0x18f   :  { %v2777_v37 = vsel %vm2727_vm9, %v2650_v6, %v2776_v18  ;;  %v483_v41 = vcombine.high %v3178_v31, %v3181_v33  ;;  %v532_v42 = vcombine.low %v3184_v47, %v3187_v49  ;;  %v533_v46 = vcombine.high %v3184_v47, %v3187_v49 }
 0x190   :  { %2793 = vst [vmem:[#allocation2 + $0x38] sm:$0xff] %v2777_v37  ;;  %v490_v28 = vrot.slane %v482_v40, %v3105_v56  ;;  %v582_v30 = vcombine.low %v3196_v60, %v3199_v61  ;;  %v583_v44 = vcombine.high %v3196_v60, %v3199_v61  ;;  %v632_v48 = vcombine.low %v440_v45, %v441_v1 }
 0x191   :  { %v497_v51 = vrot.slane %v483_v41, %v3105_v56  ;;  %v540_v31 = vrot.slane %v532_v42, %v3105_v56  ;;  %v547_v33 = vrot.slane %v533_v46, %v3105_v56  ;;  %v633_v10 = vcombine.high %v440_v45, %v441_v1 }
 0x192   :  { %v498_v52 = vcombine.high %v490_v28, %v490_v28  ;;  %v3376_v47 = vrot.slane %v490_v28, %v3105_v56  ;;  %v597_v49 = vrot.slane %v583_v44, %v3105_v56  ;;  %v590_v60 = vrot.slane %v582_v30, %v3105_v56 }
 0x193   :  { %v499_v50 = vcombine.high %v497_v51, %v497_v51  ;;  %v548_v13 = vcombine.high %v540_v31, %v540_v31  ;;  %v549_v14 = vcombine.high %v547_v33, %v547_v33  ;;  %v3384_v61 = vrot.slane %v497_v51, %v3105_v56 }
 0x194   :  { %v3380_v54 = vrot.slane %v498_v52, %v3105_v56  ;;  %v528_v55 = vcombine.high %v3376_v47, %v3376_v47  ;;  %v3389_v58 = vrot.slane %v540_v31, %v3105_v56  ;;  %v599_v36 = vcombine.high %v597_v49, %v597_v49 }
 0x195   :  { %v3392_v59 = vrot.slane %v499_v50, %v3105_v56  ;;  %v3395_v63 = vrot.slane %v547_v33, %v3105_v56  ;;  %v3398_v5 = vrot.slane %v548_v13, %v3105_v56  ;;  %v3401_v0 = vrot.slane %v549_v14, %v3105_v56 }
 0x196   :  { %v530_v8 = vcombine.high %v3380_v54, %v3380_v54  ;;  %v598_v11 = vcombine.high %v590_v60, %v590_v60  ;;  %v640_v12 = vrot.slane %v632_v48, %v3105_v56  ;;  %v647_v16 = vrot.slane %v633_v10, %v3105_v56 }
 0x197   :  { %v3408_v4 = vrot.slane %v597_v49, %v3105_v56  ;;  %v682_v53 = vcombine.low %v3315_v25, %v443_v21  ;;  %v683_v9 = vcombine.high %v3315_v25, %v443_v21  ;;  %v732_v43 = vcombine.low %v3323_v57, %v3327_v62 }
 0x198   :  { %v578_v2 = vcombine.high %v3389_v58, %v3389_v58  ;;  %v3417_v6 = vrot.slane %v599_v36, %v3105_v56  ;;  %v648_v15 = vcombine.high %v640_v12, %v640_v12  ;;  %v649_v7 = vcombine.high %v647_v16, %v647_v16 }
 0x199   :  { %v3420_v17 = vrot.slane %v640_v12, %v3105_v56  ;;  %v690_v45 = vrot.slane %v682_v53, %v3105_v56  ;;  %v697_v1 = vrot.slane %v683_v9, %v3105_v56  ;;  %v733_v19 = vcombine.high %v3323_v57, %v3327_v62 }
 0x19a   :  { %v579_v20 = vcombine.high %v3395_v63, %v3395_v63  ;;  %v580_v25 = vcombine.high %v3398_v5, %v3398_v5  ;;  %v581_v21 = vcombine.high %v3401_v0, %v3401_v0  ;;  %v3433_v27 = vrot.slane %v648_v15, %v3105_v56 }
 0x19b   :  { %v3436_v29 = vrot.slane %v590_v60, %v3105_v56  ;;  %v3439_v38 = vrot.slane %v598_v11, %v3105_v56  ;;  %v629_v57 = vcombine.high %v3408_v4, %v3408_v4  ;;  %v740_v62 = vrot.slane %v732_v43, %v3105_v56 }
 0x19c   :  { %v631_v3 = vcombine.high %v3417_v6, %v3417_v6  ;;  %v698_v39 = vcombine.high %v690_v45, %v690_v45  ;;  %v699_v24 = vcombine.high %v697_v1, %v697_v1  ;;  %v747_v18 = vrot.slane %v733_v19, %v3105_v56 }
 0x19d   :  { %v3448_v40 = vrot.slane %v647_v16, %v3105_v56  ;;  %v3451_v37 = vrot.slane %v649_v7, %v3105_v56  ;;  %v678_v41 = vcombine.high %v3420_v17, %v3420_v17  ;;  %v3456_v42 = vrot.slane %v690_v45, %v3105_v56 }
 0x19e   :  { %v680_v46 = vcombine.high %v3433_v27, %v3433_v27  ;;  %v3461_v28 = vrot.slane %v697_v1, %v3105_v56  ;;  %v749_v30 = vcombine.high %v747_v18, %v747_v18  ;;  %v782_v44 = vcombine.low %v3333_v22, %v3337_v23 }
 0x19f   :  { %v748_v48 = vcombine.high %v740_v62, %v740_v62  ;;  %v3466_v51 = vrot.slane %v740_v62, %v3105_v56  ;;  %v783_v31 = vcombine.high %v3333_v22, %v3337_v23  ;;  %v832_v33 = vcombine.low %v3343_v26, %v3347_v35 }
 0x1a0   :  { %v3473_v10 = vrot.slane %v698_v39, %v3105_v56  ;;  %v3476_v52 = vrot.slane %v699_v24, %v3105_v56  ;;  %v790_v49 = vrot.slane %v782_v44, %v3105_v56  ;;  %v833_v50 = vcombine.high %v3343_v26, %v3347_v35 }
 0x1a1   :  { %v797_v13 = vrot.slane %v783_v31, %v3105_v56  ;;  %v840_v14 = vrot.slane %v832_v33, %v3105_v56  ;;  %v882_v22 = vcombine.low %v3352_v32, %v3356_v34  ;;  %v883_v23 = vcombine.high %v3352_v32, %v3356_v34 }
 0x1a2   :  { %v3488_v60 = vrot.slane %v747_v18, %v3105_v56  ;;  %v3491_v36 = vrot.slane %v749_v30, %v3105_v56  ;;  %v798_v11 = vcombine.high %v790_v49, %v790_v49  ;;  %v847_v12 = vrot.slane %v833_v50, %v3105_v56 }
 0x1a3   :  { %v728_v26 = vcombine.high %v3456_v42, %v3456_v42  ;;  %v729_v35 = vcombine.high %v3461_v28, %v3461_v28  ;;  %v799_v16 = vcombine.high %v797_v13, %v797_v13  ;;  %v3499_v53 = vrot.slane %v790_v49, %v3105_v56 }
 0x1a4   :  { %v3502_v32 = vrot.slane %v748_v48, %v3105_v56  ;;  %v3505_v34 = vrot.slane %v798_v11, %v3105_v56  ;;  %v848_v9 = vcombine.high %v840_v14, %v840_v14  ;;  %v3508_v43 = vrot.slane %v840_v14, %v3105_v56 }
 0x1a5   :  { %v730_v15 = vcombine.high %v3473_v10, %v3473_v10  ;;  %v731_v7 = vcombine.high %v3476_v52, %v3476_v52  ;;  %v849_v45 = vcombine.high %v847_v12, %v847_v12  ;;  %v3515_v1 = vrot.slane %v847_v12, %v3105_v56 }
 0x1a6   :  { %v779_v19 = vcombine.high %v3488_v60, %v3488_v60  ;;  %v781_v62 = vcombine.high %v3491_v36, %v3491_v36  ;;  %v890_v39 = vrot.slane %v882_v22, %v3105_v56  ;;  %v897_v24 = vrot.slane %v883_v23, %v3105_v56 }
 0x1a7   :  { %v3524_v18 = vrot.slane %v797_v13, %v3105_v56  ;;  %v3527_v30 = vrot.slane %v799_v16, %v3105_v56  ;;  %v1082_v48 = vcombine.low %v3376_v47, %v3380_v54  ;;  %v3536_v33 = vrot.slane %v848_v9, %v3105_v56 }
 0x1a8   :  { %v899_v50 = vcombine.high %v897_v24, %v897_v24  ;;  %v3541_v13 = vrot.slane %v849_v45, %v3105_v56  ;;  %v1113_v23 = vcombine.low %v530_v8, %v3384_v61  ;;  %v898_v11 = vcombine.high %v890_v39, %v890_v39 }
 0x1a9   :  { %v1089_v22 = vrot.slane %v1082_v48, %v3105_v56  ;;  %v3551_v12 = vrot.slane %v897_v24, %v3105_v56  ;;  %v1096_v16 = vrot.slane %v528_v55, %v3105_v56  ;;  %v2824_v9 = vcombine.high %v3384_v61, %v3392_v59 }
 0x1aa   :  { %v3560_v45 = vrot.slane %v899_v50, %v3105_v56  ;;  %v1120_v48 = vrot.slane %v1113_v23, %v3105_v56  ;;  %v1127_v54 = vrot.slane %v3392_v59, %v3105_v56  ;;  %v1175_v8 = vcombine.low %v3398_v5, %v578_v2 }
 0x1ab   :  { %v1097_v24 = vcombine.low %v1089_v22, %v1096_v16  ;;  %v1151_v47 = vrot.slane %v2824_v9, %v3105_v56  ;;  %v1158_v55 = vrot.slane %v3389_v58, %v3105_v56  ;;  %v1206_v61 = vcombine.low %v3395_v63, %v3401_v0 }
 0x1ac   :  { %v1098_v23 = vcombine.high %v1089_v22, %v1096_v16  ;;  %v1128_v14 = vcombine.low %v1120_v48, %v1127_v54  ;;  %v1129_v59 = vcombine.high %v1120_v48, %v1127_v54  ;;  %v1182_v31 = vrot.slane %v1175_v8, %v3105_v56 }
 0x1ad   :  { %v1159_v49 = vcombine.low %v1151_v47, %v1158_v55  ;;  %v1160_v44 = vcombine.high %v1151_v47, %v1158_v55  ;;  %v1189_v2 = vrot.slane %v580_v25, %v3105_v56  ;;  %v881_v58 = vcombine.high %v3541_v13, %v3541_v13 }
 0x1ae   :  { %v3584_v9 = vrot.slane %v890_v39, %v3105_v56  ;;  %v1213_v50 = vrot.slane %v1206_v61, %v3105_v56  ;;  %v1237_v22 = vcombine.low %v581_v21, %v3436_v29  ;;  %v3592_v16 = vrot.slane %v898_v11, %v3105_v56 }
 0x1af   :  { %v929_v5 = vcombine.high %v3551_v12, %v3551_v12  ;;  %v3599_v48 = vrot.slane %v1097_v24, %v3105_v56  ;;  %v3602_v39 = vrot.slane %v1098_v23, %v3105_v56  ;;  %v1220_v0 = vrot.slane %v579_v20, %v3105_v56 }
 0x1b0   :  { %v1244_v21 = vrot.slane %v1237_v22, %v3105_v56  ;;  %v1251_v11 = vrot.slane %v3439_v38, %v3105_v56  ;;  %v3612_v54 = vrot.slane %v1128_v14, %v3105_v56  ;;  %v3615_v8 = vrot.slane %v1129_v59, %v3105_v56 }
 0x1b1   :  { %v1190_v24 = vcombine.low %v1182_v31, %v1189_v2  ;;  %v2825_v47 = vcombine.high %v3436_v29, %v3439_v38  ;;  %v1191_v55 = vcombine.high %v1182_v31, %v1189_v2  ;;  %v1221_v61 = vcombine.low %v1213_v50, %v1220_v0 }
 0x1b2   :  { %v1252_v23 = vcombine.low %v1244_v21, %v1251_v11  ;;  %v1253_v63 = vcombine.high %v1244_v21, %v1251_v11  ;;  %v1282_v22 = vrot.slane %v3408_v4, %v3105_v56  ;;  %v1299_v14 = vcombine.low %v3417_v6, %v629_v57 }
 0x1b3   :  { %v1275_v20 = vrot.slane %v2825_v47, %v3105_v56  ;;  %v1330_v59 = vcombine.low %v3420_v17, %v3433_v27  ;;  %v3629_v25 = vrot.slane %v1159_v49, %v3105_v56  ;;  %v3632_v29 = vrot.slane %v1160_v44, %v3105_v56 }
 0x1b4   :  { %v1313_v38 = vrot.slane %v631_v3, %v3105_v56  ;;  %v1361_v4 = vcombine.low %v680_v46, %v3448_v40  ;;  %v1306_v2 = vrot.slane %v1299_v14, %v3105_v56  ;;  %v1222_v21 = vcombine.high %v1213_v50, %v1220_v0 }
 0x1b5   :  { %v1283_v57 = vcombine.low %v1275_v20, %v1282_v22  ;;  %v1284_v31 = vcombine.high %v1275_v20, %v1282_v22  ;;  %v1337_v49 = vrot.slane %v1330_v59, %v3105_v56  ;;  %v1375_v11 = vrot.slane %v3451_v37, %v3105_v56 }
 0x1b6   :  { %v1368_v44 = vrot.slane %v1361_v4, %v3105_v56  ;;  %v2826_v6 = vcombine.high %v3448_v40, %v3451_v37  ;;  %v3650_v3 = vrot.slane %v1190_v24, %v3105_v56  ;;  %v3653_v27 = vrot.slane %v1191_v55, %v3105_v56 }
 0x1b7   :  { %v3656_v46 = vrot.slane %v1221_v61, %v3105_v56  ;;  %v1344_v50 = vrot.slane %v678_v41, %v3105_v56  ;;  %v1314_v0 = vcombine.low %v1306_v2, %v1313_v38  ;;  %v1406_v40 = vrot.slane %v3456_v42, %v3105_v56 }
 0x1b8   :  { %v1376_v47 = vcombine.low %v1368_v44, %v1375_v11  ;;  %v1377_v20 = vcombine.high %v1368_v44, %v1375_v11  ;;  %v1315_v37 = vcombine.high %v1306_v2, %v1313_v38  ;;  %v1399_v22 = vrot.slane %v2826_v6, %v3105_v56 }
 0x1b9   :  { %v1345_v24 = vcombine.low %v1337_v49, %v1344_v50  ;;  %v1423_v55 = vcombine.low %v3473_v10, %v728_v26  ;;  %v3670_v61 = vrot.slane %v1222_v21, %v3105_v56  ;;  %v3673_v17 = vrot.slane %v1252_v23, %v3105_v56 }
 0x1ba   :  { %v3676_v41 = vrot.slane %v1253_v63, %v3105_v56  ;;  %v3679_v14 = vrot.slane %v1283_v57, %v3105_v56  ;;  %v1407_v59 = vcombine.low %v1399_v22, %v1406_v40  ;;  %v1408_v38 = vcombine.high %v1399_v22, %v1406_v40 }
 0x1bb   :  { %v1430_v4 = vrot.slane %v1423_v55, %v3105_v56  ;;  %v1437_v42 = vrot.slane %v730_v15, %v3105_v56  ;;  %v3687_v26 = vrot.slane %v1284_v31, %v3105_v56  ;;  %v1346_v23 = vcombine.high %v1337_v49, %v1344_v50 }
 0x1bc   :  { %v1454_v63 = vcombine.low %v3461_v28, %v3476_v52  ;;  %v1485_v57 = vcombine.low %v731_v7, %v3466_v51  ;;  %v3696_v2 = vrot.slane %v1314_v0, %v3105_v56  ;;  %v3699_v21 = vrot.slane %v1315_v37, %v3105_v56 }
 0x1bd   :  { %v3702_v10 = vrot.slane %v1345_v24, %v3105_v56  ;;  %v1468_v15 = vrot.slane %v729_v35, %v3105_v56  ;;  %v1499_v52 = vrot.slane %v3502_v32, %v3105_v56  ;;  %v2827_v7 = vcombine.high %v3466_v51, %v3502_v32 }
 0x1be   :  { %v1461_v31 = vrot.slane %v1454_v63, %v3105_v56  ;;  %v1492_v49 = vrot.slane %v1485_v57, %v3105_v56  ;;  %v1438_v44 = vcombine.low %v1430_v4, %v1437_v42  ;;  %v1439_v11 = vcombine.high %v1430_v4, %v1437_v42 }
 0x1bf   :  { %v1530_v6 = vrot.slane %v3488_v60, %v3105_v56  ;;  %v1547_v28 = vcombine.low %v3491_v36, %v779_v19  ;;  %v1561_v40 = vrot.slane %v781_v62, %v3105_v56  ;;  %v1523_v51 = vrot.slane %v2827_v7, %v3105_v56 }
 0x1c0   :  { %v1469_v35 = vcombine.low %v1461_v31, %v1468_v15  ;;  %v1500_v50 = vcombine.low %v1492_v49, %v1499_v52  ;;  %v1501_v0 = vcombine.high %v1492_v49, %v1499_v52  ;;  %v1470_v37 = vcombine.high %v1461_v31, %v1468_v15 }
 0x1c1   :  { %v1554_v32 = vrot.slane %v1547_v28, %v3105_v56  ;;  %v1578_v24 = vcombine.low %v3499_v53, %v3505_v34  ;;  %v3729_v60 = vrot.slane %v1346_v23, %v3105_v56  ;;  %v3732_v19 = vrot.slane %v1376_v47, %v3105_v56 }
 0x1c2   :  { %v3735_v22 = vrot.slane %v1377_v20, %v3105_v56  ;;  %v3738_v36 = vrot.slane %v1407_v59, %v3105_v56  ;;  %v3741_v62 = vrot.slane %v1408_v38, %v3105_v56  ;;  %v3744_v55 = vrot.slane %v1438_v44, %v3105_v56 }
 0x1c3   :  { %v1531_v4 = vcombine.low %v1523_v51, %v1530_v6  ;;  %v1532_v42 = vcombine.high %v1523_v51, %v1530_v6  ;;  %v3747_v23 = vrot.slane %v1439_v11, %v3105_v56  ;;  %v1585_v47 = vrot.slane %v1578_v24, %v3105_v56 }
 0x1c4   :  { %v4169_v20 = vcombine.high %v3505_v34, %v3505_v34  ;;  %v2828_v59 = vcombine.high %v3524_v18, %v3527_v30  ;;  %v3757_v38 = vrot.slane %v1469_v35, %v3105_v56  ;;  %v3760_v57 = vrot.slane %v1470_v37, %v3105_v56 }
 0x1c5   :  { %v1562_v15 = vcombine.low %v1554_v32, %v1561_v40  ;;  %v4170_v31 = vcombine.high %v3499_v53, %v3499_v53  ;;  %v1563_v52 = vcombine.high %v1554_v32, %v1561_v40  ;;  %v1623_v34 = vrot.slane %v3527_v30, %v3105_v56 }
 0x1c6   :  { %v1609_v63 = vcombine.low %v4169_v20, %v3524_v18  ;;  %v1647_v18 = vrot.slane %v2828_v59, %v3105_v56  ;;  %v1654_v6 = vrot.slane %v3508_v43, %v3105_v56  ;;  %v4171_v28 = vcombine.high %v3508_v43, %v3508_v43 }
 0x1c7   :  { %v1592_v49 = vrot.slane %v4170_v31, %v3105_v56  ;;  %v3777_v53 = vrot.slane %v1500_v50, %v3105_v56  ;;  %v1702_v30 = vcombine.low %v3515_v1, %v3541_v13  ;;  %v3782_v51 = vrot.slane %v1501_v0, %v3105_v56 }
 0x1c8   :  { %v1616_v7 = vrot.slane %v1609_v63, %v3105_v56  ;;  %v1671_v35 = vcombine.low %v3536_v33, %v4171_v28  ;;  %v3785_v32 = vrot.slane %v1531_v4, %v3105_v56  ;;  %v1655_v24 = vcombine.low %v1647_v18, %v1654_v6 }
 0x1c9   :  { %v1593_v44 = vcombine.low %v1585_v47, %v1592_v49  ;;  %v1594_v11 = vcombine.high %v1585_v47, %v1592_v49  ;;  %v1656_v47 = vcombine.high %v1647_v18, %v1654_v6  ;;  %v3788_v43 = vrot.slane %v1532_v42, %v3105_v56 }
 0x1ca   :  { %v1624_v40 = vcombine.low %v1616_v7, %v1623_v34  ;;  %v1625_v37 = vcombine.high %v1616_v7, %v1623_v34  ;;  %v1678_v20 = vrot.slane %v1671_v35, %v3105_v56  ;;  %v4172_v50 = vcombine.high %v3536_v33, %v3536_v33 }
 0x1cb   :  { %v1733_v0 = vcombine.low %v881_v58, %v3584_v9  ;;  %v3800_v4 = vrot.slane %v1562_v15, %v3105_v56  ;;  %v3803_v59 = vrot.slane %v1563_v52, %v3105_v56  ;;  %v3806_v42 = vrot.slane %v1593_v44, %v3105_v56 }
 0x1cc   :  { %v1685_v63 = vrot.slane %v4172_v50, %v3105_v56  ;;  %v3809_v31 = vrot.slane %v1594_v11, %v3105_v56  ;;  %v3812_v33 = vrot.slane %v1624_v40, %v3105_v56  ;;  %v1709_v49 = vrot.slane %v1702_v30, %v3105_v56 }
 0x1cd   :  { %v3816_v13 = vrot.slane %v1733_v0, %v3105_v56  ;;  %v1747_v58 = vrot.slane %v3592_v16, %v3105_v56  ;;  %v3821_v15 = vrot.slane %v1625_v37, %v3105_v56  ;;  %v3824_v52 = vrot.slane %v1655_v24, %v3105_v56 }
 0x1ce   :  { %v4173_v7 = vcombine.high %v3515_v1, %v3515_v1  ;;  %v2829_v18 = vcombine.high %v3584_v9, %v3592_v16  ;;  %v1686_v44 = vcombine.low %v1678_v20, %v1685_v63  ;;  %v1687_v11 = vcombine.high %v1678_v20, %v1685_v63 }
 0x1cf   :  { %v1748_v6 = vcombine.low %v3816_v13, %v1747_v58  ;;  %v1749_v28 = vcombine.high %v3816_v13, %v1747_v58  ;;  %v1778_v40 = vrot.slane %v3551_v12, %v3105_v56  ;;  %v1795_v1 = vcombine.low %v3560_v45, %v929_v5 }
 0x1d0   :  { %v1716_v34 = vrot.slane %v4173_v7, %v3105_v56  ;;  %v1771_v35 = vrot.slane %v2829_v18, %v3105_v56  ;;  %v2139_v37 = vsel %vm2138_vm2, %v3599_v48, -inf  ;;  %v3844_v9 = vrot.slane %v1656_v47, %v3105_v56 }
 0x1d1   :  { %v2140_v30 = vrot.slane %v2139_v37, 4  ;;  %v2146_v24 = vsel %vm2138_vm2, %v3602_v39, -inf  ;;  %v2153_v12 = vsel %vm2138_vm2, %v3612_v54, -inf  ;;  %v2160_v5 = vsel %vm2138_vm2, %v3615_v8, -inf }
 0x1d2   :  { %4174 = vst [vmem:[#allocation5_spill] sm:$0xff] %v3844_v9  ;;  %v1717_v16 = vcombine.low %v1709_v49, %v1716_v34  ;;  %v1718_v20 = vcombine.high %v1709_v49, %v1716_v34  ;;  %v1779_v50 = vcombine.low %v1771_v35, %v1778_v40  ;;  %v1780_v63 = vcombine.high %v1771_v35, %v1778_v40 }
 0x1d3   :  { %v2147_v0 = vrot.slane %v2146_v24, 4  ;;  %v2141_v13 = vmax.f32 %v2139_v37, %v2140_v30  ;;  %v2167_v48 = vsel %vm2138_vm2, %v3629_v25, -inf  ;;  %v3855_v47 = vrot.slane %v1686_v44, %v3105_v56 }
 0x1d4   :  { %v3858_v58 = vrot.slane %v1687_v11, %v3105_v56  ;;  %v1802_v39 = vrot.slane %v1795_v1, %v3105_v56  ;;  %v4177_v49 = vcombine.high %v3560_v45, %v3560_v45  ;;  %v2154_v18 = vrot.slane %v2153_v12, 4 }
 0x1d5   :  { %4175 = vst [vmem:[#allocation6_spill] sm:$0xff] %v3855_v47  ;;  %v2142_v54 = vrot.slane %v2141_v13, 2  ;;  %v2148_v34 = vmax.f32 %v2146_v24, %v2147_v0  ;;  %v2161_v8 = vrot.slane %v2160_v5, 4  ;;  %v3866_v35 = vrot.slane %v1717_v16, %v3105_v56 }
 0x1d6   :  { %4176 = vst [vmem:[#allocation7_spill] sm:$0xff] %v3858_v58  ;;  %v1809_v7 = vrot.slane %v4177_v49, %v3105_v56  ;;  %v3869_v25 = vrot.slane %v1718_v20, %v3105_v56  ;;  %v2168_v44 = vrot.slane %v2167_v48, 4  ;;  %v2174_v11 = vsel %vm2138_vm2, %v3632_v29, -inf }
 0x1d7   :  { %4178 = vst [vmem:[#allocation8_spill] sm:$0xff] %v3866_v35  ;;  %v2143_v40 = vmax.f32 %v2141_v13, %v2142_v54  ;;  %v2149_v1 = vrot.slane %v2148_v34, 2  ;;  %v2155_v37 = vmax.f32 %v2153_v12, %v2154_v18  ;;  %v2162_v30 = vmax.f32 %v2160_v5, %v2161_v8 }
 0x1d8   :  { %4179 = vst [vmem:[#allocation9_spill] sm:$0xff] %v3869_v25  ;;  %v2169_v45 = vmax.f32 %v2167_v48, %v2168_v44  ;;  %v2175_v49 = vrot.slane %v2174_v11, 4  ;;  %v2181_v24 = vsel %vm2138_vm2, %v3650_v3, -inf  ;;  %v2188_v16 = vsel %vm2138_vm2, %v3653_v27, -inf }
 0x1d9   :  { %v1810_v0 = vcombine.low %v1802_v39, %v1809_v7  ;;  %v2150_v35 = vmax.f32 %v2148_v34, %v2149_v1  ;;  %v2156_v20 = vrot.slane %v2155_v37, 2  ;;  %v2163_v25 = vrot.slane %v2162_v30, 2 }
 0x1da   :  { %v2170_v58 = vrot.slane %v2169_v45, 2  ;;  %v2176_v47 = vmax.f32 %v2174_v11, %v2175_v49  ;;  %v2182_v9 = vrot.slane %v2181_v24, 4  ;;  %v2189_v29 = vrot.slane %v2188_v16, 4 }
 0x1db   :  { %v3878_v13 = vrot.slane %v1748_v6, %v3105_v56  ;;  %v1811_v12 = vcombine.high %v1802_v39, %v1809_v7  ;;  %v2144_v5 = vrot.slane %v2143_v40, 1  ;;  %v2151_v48 = vrot.slane %v2150_v35, 1 }
 0x1dc   :  { %v2157_v54 = vmax.f32 %v2155_v37, %v2156_v20  ;;  %v2177_v18 = vrot.slane %v2176_v47, 2  ;;  %v2183_v3 = vmax.f32 %v2181_v24, %v2182_v9  ;;  %v2190_v8 = vmax.f32 %v2188_v16, %v2189_v29 }
 0x1dd   :  { %v3881_v27 = vrot.slane %v1749_v28, %v3105_v56  ;;  %v3884_v34 = vrot.slane %v1779_v50, %v3105_v56  ;;  %v3887_v44 = vrot.slane %v1780_v63, %v3105_v56  ;;  %v2195_v6 = vsel %vm2138_vm2, %v3656_v46, -inf }
 0x1de   :  { %v3892_v39 = vrot.slane %v1810_v0, %v3105_v56  ;;  %v2164_v7 = vmax.f32 %v2162_v30, %v2163_v25  ;;  %v2171_v11 = vmax.f32 %v2169_v45, %v2170_v58  ;;  %v2184_v1 = vrot.slane %v2183_v3, 2 }
 0x1df   :  { %v3895_v9 = vrot.slane %v1811_v12, %v3105_v56  ;;  %v3897_v28 = vmax.f32 %v2143_v40, %v2144_v5  ;;  %v2196_v37 = vrot.slane %v2195_v6, 4  ;;  %v2202_v50 = vsel %vm2138_vm2, %v3670_v61, -inf }
 0x1e0   :  { %v3901_v63 = vmax.f32 %v2150_v35, %v2151_v48  ;;  %v2158_v49 = vrot.slane %v2157_v54, 1  ;;  %v2178_v24 = vmax.f32 %v2176_v47, %v2177_v18  ;;  %v2191_v46 = vrot.slane %v2190_v8, 2 }
 0x1e1   :  { %4180 = vst [vmem:[#allocation10_spill] sm:$0xff] %v3895_v9  ;;  %4181 = vst [vmem:[#allocation11_spill] sm:$0xff] %v3897_v28  ;;  %v2197_v16 = vmax.f32 %v2195_v6, %v2196_v37  ;;  %v2203_v0 = vrot.slane %v2202_v50, 4  ;;  %v2209_v58 = vsel %vm2138_vm2, %v3673_v17, -inf  ;;  %v2216_v56 = vsel %vm2138_vm2, %v3676_v41, -inf }
 0x1e2   :  { %4182 = vst [vmem:[#allocation12_spill] sm:$0xff] %v3901_v63  ;;  %v2165_v25 = vrot.slane %v2164_v7, 1  ;;  %v2172_v40 = vrot.slane %v2171_v11, 1  ;;  %v2185_v30 = vmax.f32 %v2183_v3, %v2184_v1  ;;  %v2210_v45 = vrot.slane %v2209_v58, 4 }
 0x1e3   :  { %v2198_v20 = vrot.slane %v2197_v16, 2  ;;  %v2204_v29 = vmax.f32 %v2202_v50, %v2203_v0  ;;  %v2217_v61 = vrot.slane %v2216_v56, 4  ;;  %v2223_v35 = vsel %vm2138_vm2, %v3679_v14, -inf }
 0x1e4   :  { %v2179_v47 = vrot.slane %v2178_v24, 1  ;;  %v2192_v12 = vmax.f32 %v2190_v8, %v2191_v46  ;;  %v2211_v5 = vmax.f32 %v2209_v58, %v2210_v45  ;;  %v2224_v48 = vrot.slane %v2223_v35, 4 }
 0x1e5   :  { %v2199_v18 = vmax.f32 %v2197_v16, %v2198_v20  ;;  %v2205_v6 = vrot.slane %v2204_v29, 2  ;;  %v2218_v17 = vmax.f32 %v2216_v56, %v2217_v61  ;;  %v2230_v41 = vsel %vm2138_vm2, %v3687_v26, -inf }
 0x1e6   :  { %v2212_v37 = vrot.slane %v2211_v5, 2  ;;  %v2225_v63 = vmax.f32 %v2223_v35, %v2224_v48  ;;  %v2231_v3 = vrot.slane %v2230_v41, 4  ;;  %v2237_v1 = vsel %vm2138_vm2, %v3696_v2, -inf }
 0x1e7   :  { %v2186_v50 = vrot.slane %v2185_v30, 1  ;;  %v2206_v0 = vmax.f32 %v2204_v29, %v2205_v6  ;;  %v2219_v28 = vrot.slane %v2218_v17, 2  ;;  %v2238_v14 = vrot.slane %v2237_v1, 4 }
 0x1e8   :  { %v2193_v9 = vrot.slane %v2192_v12, 1  ;;  %v2213_v8 = vmax.f32 %v2211_v5, %v2212_v37  ;;  %v2232_v46 = vmax.f32 %v2230_v41, %v2231_v3  ;;  %v2244_v16 = vsel %vm2138_vm2, %v3699_v21, -inf }
 0x1e9   :  { %v3915_v58 = vmax.f32 %v2157_v54, %v2158_v49  ;;  %v3917_v56 = vmax.f32 %v2164_v7, %v2165_v25  ;;  %v2200_v26 = vrot.slane %v2199_v18, 1  ;;  %v2239_v45 = vmax.f32 %v2237_v1, %v2238_v14 }
 0x1ea   :  { %v3919_v20 = vmax.f32 %v2171_v11, %v2172_v40  ;;  %v2207_v61 = vrot.slane %v2206_v0, 1  ;;  %v2226_v2 = vrot.slane %v2225_v63, 2  ;;  %v2245_v35 = vrot.slane %v2244_v16, 4 }
 0x1eb   :  { %v3921_v29 = vmax.f32 %v2178_v24, %v2179_v47  ;;  %v3923_v48 = vmax.f32 %v2185_v30, %v2186_v50  ;;  %v2220_v5 = vmax.f32 %v2218_v17, %v2219_v28  ;;  %v2251_v6 = vsel %vm2138_vm2, %v3702_v10, -inf }
 0x1ec   :  { %v3927_v21 = vmax.f32 %v2192_v12, %v2193_v9  ;;  %v2214_v54 = vrot.slane %v2213_v8, 1  ;;  %v2233_v7 = vrot.slane %v2232_v46, 2  ;;  %v2246_v49 = vmax.f32 %v2244_v16, %v2245_v35 }
 0x1ed   :  { %v3929_v25 = vmax.f32 %v2199_v18, %v2200_v26  ;;  %v2240_v11 = vrot.slane %v2239_v45, 2  ;;  %v2252_v40 = vrot.slane %v2251_v6, 4  ;;  %v2258_v41 = vsel %vm2138_vm2, %v3729_v60, -inf }
 0x1ee   :  { %v3933_v24 = vmax.f32 %v2206_v0, %v2207_v61  ;;  %v2227_v30 = vmax.f32 %v2225_v63, %v2226_v2  ;;  %v2247_v47 = vrot.slane %v2246_v49, 2  ;;  %v2259_v28 = vrot.slane %v2258_v41, 4 }
 0x1ef   :  { %v2221_v17 = vrot.slane %v2220_v5, 1  ;;  %v2253_v37 = vmax.f32 %v2251_v6, %v2252_v40  ;;  %v2265_v10 = vsel %vm2138_vm2, %v3732_v19, -inf  ;;  %v2272_v9 = vsel %vm2138_vm2, %v3735_v22, -inf }
 0x1f0   :  { %v3939_v12 = vmax.f32 %v2213_v8, %v2214_v54  ;;  %v2234_v18 = vmax.f32 %v2232_v46, %v2233_v7  ;;  %v2260_v3 = vmax.f32 %v2258_v41, %v2259_v28  ;;  %v2266_v1 = vrot.slane %v2265_v10, 4 }
 0x1f1   :  { %v2241_v50 = vmax.f32 %v2239_v45, %v2240_v11  ;;  %v2254_v60 = vrot.slane %v2253_v37, 2  ;;  %v2273_v0 = vrot.slane %v2272_v9, 4  ;;  %v2279_v63 = vsel %vm2138_vm2, %v3738_v36, -inf }
 0x1f2   :  { %v2248_v14 = vmax.f32 %v2246_v49, %v2247_v47  ;;  %v2261_v16 = vrot.slane %v2260_v3, 2  ;;  %v2267_v26 = vmax.f32 %v2265_v10, %v2266_v1  ;;  %v2280_v61 = vrot.slane %v2279_v63, 4 }
 0x1f3   :  { %v2255_v2 = vmax.f32 %v2253_v37, %v2254_v60  ;;  %v2274_v19 = vmax.f32 %v2272_v9, %v2273_v0  ;;  %v2286_v22 = vsel %vm2138_vm2, %v3741_v62, -inf  ;;  %v2293_v8 = vsel %vm2138_vm2, %v3744_v55, -inf }
 0x1f4   :  { %v2228_v46 = vrot.slane %v2227_v30, 1  ;;  %v2235_v35 = vrot.slane %v2234_v18, 1  ;;  %v2262_v45 = vmax.f32 %v2260_v3, %v2261_v16  ;;  %v2281_v6 = vmax.f32 %v2279_v63, %v2280_v61 }
 0x1f5   :  { %v2242_v54 = vrot.slane %v2241_v50, 1  ;;  %v2268_v7 = vrot.slane %v2267_v26, 2  ;;  %v2287_v11 = vrot.slane %v2286_v22, 4  ;;  %v2294_v36 = vrot.slane %v2293_v8, 4 }
 0x1f6   :  { %v3947_v49 = vmax.f32 %v2220_v5, %v2221_v17  ;;  %v2249_v40 = vrot.slane %v2248_v14, 1  ;;  %v2256_v41 = vrot.slane %v2255_v2, 1  ;;  %v2300_v47 = vsel %vm2138_vm2, %v3747_v23, -inf }
 0x1f7   :  { %v2275_v28 = vrot.slane %v2274_v19, 2  ;;  %v2282_v62 = vrot.slane %v2281_v6, 2  ;;  %v2288_v37 = vmax.f32 %v2286_v22, %v2287_v11  ;;  %v2295_v10 = vmax.f32 %v2293_v8, %v2294_v36 }
 0x1f8   :  { %v3951_v55 = vmax.f32 %v2227_v30, %v2228_v46  ;;  %v3953_v9 = vmax.f32 %v2234_v18, %v2235_v35  ;;  %v2263_v3 = vrot.slane %v2262_v45, 1  ;;  %v2301_v1 = vrot.slane %v2300_v47, 4 }
 0x1f9   :  { %v3955_v60 = vmax.f32 %v2241_v50, %v2242_v54  ;;  %v2269_v0 = vmax.f32 %v2267_v26, %v2268_v7  ;;  %v2289_v5 = vrot.slane %v2288_v37, 2  ;;  %v2307_v17 = vsel %vm2138_vm2, %v3757_v38, -inf }
 0x1fa   :  { %v3959_v63 = vmax.f32 %v2248_v14, %v2249_v40  ;;  %v2296_v23 = vrot.slane %v2295_v10, 2  ;;  %v2302_v16 = vmax.f32 %v2300_v47, %v2301_v1  ;;  %v2308_v61 = vrot.slane %v2307_v17, 4 }
 0x1fb   :  { %v3961_v22 = vmax.f32 %v2255_v2, %v2256_v41  ;;  %v2276_v30 = vmax.f32 %v2274_v19, %v2275_v28  ;;  %v2283_v8 = vmax.f32 %v2281_v6, %v2282_v62  ;;  %v2314_v18 = vsel %vm2138_vm2, %v3760_v57, -inf }
 0x1fc   :  { %v3965_v46 = vmax.f32 %v2262_v45, %v2263_v3  ;;  %v2303_v50 = vrot.slane %v2302_v16, 2  ;;  %v2309_v26 = vmax.f32 %v2307_v17, %v2308_v61  ;;  %v2315_v35 = vrot.slane %v2314_v18, 4 }
 0x1fd   :  { %v2270_v54 = vrot.slane %v2269_v0, 1  ;;  %v2290_v7 = vmax.f32 %v2288_v37, %v2289_v5  ;;  %v2321_v38 = vsel %vm2138_vm2, %v3777_v53, -inf  ;;  %v2328_v14 = vsel %vm2138_vm2, %v3782_v51, -inf }
 0x1fe   :  { %v2297_v2 = vmax.f32 %v2295_v10, %v2296_v23  ;;  %v2310_v11 = vrot.slane %v2309_v26, 2  ;;  %v2316_v19 = vmax.f32 %v2314_v18, %v2315_v35  ;;  %v2322_v6 = vrot.slane %v2321_v38, 4 }
 0x1ff   :  { %v2277_v36 = vrot.slane %v2276_v30, 1  ;;  %v2284_v40 = vrot.slane %v2283_v8, 1  ;;  %v2329_v57 = vrot.slane %v2328_v14, 4  ;;  %v2335_v45 = vsel %vm2138_vm2, %v3785_v32, -inf }
 0x200   :  { %v2304_v41 = vmax.f32 %v2302_v16, %v2303_v50  ;;  %v2311_v47 = vmax.f32 %v2309_v26, %v2310_v11  ;;  %v2317_v28 = vrot.slane %v2316_v19, 2  ;;  %v2323_v62 = vmax.f32 %v2321_v38, %v2322_v6 }
 0x201   :  { %v2330_v37 = vmax.f32 %v2328_v14, %v2329_v57  ;;  %v2336_v3 = vrot.slane %v2335_v45, 4  ;;  %v2342_v53 = vsel %vm2138_vm2, %v3788_v43, -inf  ;;  %v2349_v51 = vsel %vm2138_vm2, %v3800_v4, -inf }
 0x202   :  { %v2291_v10 = vrot.slane %v2290_v7, 1  ;;  %v2298_v1 = vrot.slane %v2297_v2, 1  ;;  %v2318_v5 = vmax.f32 %v2316_v19, %v2317_v28  ;;  %v2324_v17 = vrot.slane %v2323_v62, 2 }
 0x203   :  { %v2331_v23 = vrot.slane %v2330_v37, 2  ;;  %v2337_v61 = vmax.f32 %v2335_v45, %v2336_v3  ;;  %v2343_v18 = vrot.slane %v2342_v53, 4  ;;  %v2350_v32 = vrot.slane %v2349_v51, 4 }
 0x204   :  { %v3977_v16 = vmax.f32 %v2269_v0, %v2270_v54  ;;  %v3979_v50 = vmax.f32 %v2276_v30, %v2277_v36  ;;  %v2305_v26 = vrot.slane %v2304_v41, 1  ;;  %v2356_v35 = vsel %vm2138_vm2, %v3803_v59, -inf }
 0x205   :  { %v2312_v43 = vrot.slane %v2311_v47, 1  ;;  %v2338_v38 = vrot.slane %v2337_v61, 2  ;;  %v2344_v14 = vmax.f32 %v2342_v53, %v2343_v18  ;;  %v2351_v4 = vmax.f32 %v2349_v51, %v2350_v32 }
 0x206   :  { %v3983_v11 = vmax.f32 %v2283_v8, %v2284_v40  ;;  %v3985_v19 = vmax.f32 %v2290_v7, %v2291_v10  ;;  %v2357_v6 = vrot.slane %v2356_v35, 4  ;;  %v2363_v57 = vsel %vm2138_vm2, %v3806_v42, -inf }
 0x207   :  { %v3989_v0 = vmax.f32 %v2297_v2, %v2298_v1  ;;  %v2319_v30 = vrot.slane %v2318_v5, 1  ;;  %v2325_v54 = vmax.f32 %v2323_v62, %v2324_v17  ;;  %v2332_v36 = vmax.f32 %v2330_v37, %v2331_v23 }
 0x208   :  { %v2345_v45 = vrot.slane %v2344_v14, 2  ;;  %v2358_v28 = vmax.f32 %v2356_v35, %v2357_v6  ;;  %v2364_v59 = vrot.slane %v2363_v57, 4  ;;  %v2370_v3 = vsel %vm2138_vm2, %v3809_v31, -inf }
 0x209   :  { %v3993_v53 = vmax.f32 %v2304_v41, %v2305_v26  ;;  %v3995_v8 = vmax.f32 %v2311_v47, %v2312_v43  ;;  %v2339_v7 = vmax.f32 %v2337_v61, %v2338_v38  ;;  %v2352_v40 = vrot.slane %v2351_v4, 2 }
 0x20a   :  { %v2359_v51 = vrot.slane %v2358_v28, 2  ;;  %v2365_v10 = vmax.f32 %v2363_v57, %v2364_v59  ;;  %v2371_v42 = vrot.slane %v2370_v3, 4  ;;  %v2377_v2 = vsel %vm2138_vm2, %v3812_v33, -inf }
 0x20b   :  { %v3999_v62 = vmax.f32 %v2318_v5, %v2319_v30  ;;  %v2326_v37 = vrot.slane %v2325_v54, 1  ;;  %v2333_v1 = vrot.slane %v2332_v36, 1  ;;  %v2378_v17 = vrot.slane %v2377_v2, 4  ;;  %v4183_v30 = vld [vmem:[#allocation5_spill] sm:$0xff] }
 0x20c   :  { %v2346_v23 = vmax.f32 %v2344_v14, %v2345_v45  ;;  %v2366_v18 = vrot.slane %v2365_v10, 2  ;;  %v2372_v31 = vmax.f32 %v2370_v3, %v2371_v42  ;;  %v2384_v41 = vsel %vm2138_vm2, %v3821_v15, -inf }
 0x20d   :  { %v2340_v47 = vrot.slane %v2339_v7, 1  ;;  %v2353_v61 = vmax.f32 %v2351_v4, %v2352_v40  ;;  %v2379_v32 = vmax.f32 %v2377_v2, %v2378_v17  ;;  %v2385_v26 = vrot.slane %v2384_v41, 4 }
 0x20e   :  { %v2360_v35 = vmax.f32 %v2358_v28, %v2359_v51  ;;  %v2367_v43 = vmax.f32 %v2365_v10, %v2366_v18  ;;  %v2373_v38 = vrot.slane %v2372_v31, 2  ;;  %v2391_v33 = vsel %vm2138_vm2, %v3824_v52, -inf  ;;  %v4184_v28 = vld [vmem:[#allocation6_spill] sm:$0xff] }
 0x20f   :  { %v2380_v5 = vrot.slane %v2379_v32, 2  ;;  %v2386_v6 = vmax.f32 %v2384_v41, %v2385_v26  ;;  %v2392_v57 = vrot.slane %v2391_v33, 4  ;;  %v2398_v14 = vsel %vm2138_vm2, %v4183_v30, -inf }
 0x210   :  { %v4007_v45 = vmax.f32 %v2325_v54, %v2326_v37  ;;  %v2347_v59 = vrot.slane %v2346_v23, 1  ;;  %v2374_v15 = vmax.f32 %v2372_v31, %v2373_v38  ;;  %v2399_v3 = vrot.slane %v2398_v14, 4  ;;  %v4186_v54 = vld [vmem:[#allocation7_spill] sm:$0xff] }
 0x211   :  { %v2354_v4 = vrot.slane %v2353_v61, 1  ;;  %v2381_v40 = vmax.f32 %v2379_v32, %v2380_v5  ;;  %v2387_v42 = vrot.slane %v2386_v6, 2  ;;  %v2405_v51 = vsel %vm2138_vm2, %v4184_v28, -inf }
 0x212   :  { %v4011_v10 = vmax.f32 %v2332_v36, %v2333_v1  ;;  %v2393_v52 = vmax.f32 %v2391_v33, %v2392_v57  ;;  %v2400_v2 = vmax.f32 %v2398_v14, %v2399_v3  ;;  %v2406_v17 = vrot.slane %v2405_v51, 4  ;;  %v4188_v1 = vld [vmem:[#allocation8_spill] sm:$0xff] }
 0x213   :  { %v4013_v18 = vmax.f32 %v2339_v7, %v2340_v47  ;;  %v2361_v41 = vrot.slane %v2360_v35, 1  ;;  %v2368_v26 = vrot.slane %v2367_v43, 1  ;;  %v2412_v37 = vsel %vm2138_vm2, %v4186_v54, -inf }
 0x214   :  { %v4017_v31 = vmax.f32 %v2346_v23, %v2347_v59  ;;  %v2375_v38 = vrot.slane %v2374_v15, 1  ;;  %v2407_v32 = vmax.f32 %v2405_v51, %v2406_v17  ;;  %v2413_v5 = vrot.slane %v2412_v37, 4  ;;  %v4191_v23 = vld [vmem:[#allocation9_spill] sm:$0xff] }
 0x215   :  { %4185 = vst [vmem:[#allocation5_spill] sm:$0xff] %v4013_v18  ;;  %v4019_v30 = vmax.f32 %v2353_v61, %v2354_v4  ;;  %v2382_v28 = vrot.slane %v2381_v40, 1  ;;  %v2388_v36 = vmax.f32 %v2386_v6, %v2387_v42  ;;  %v2419_v33 = vsel %vm2138_vm2, %v4188_v1, -inf }
 0x216   :  { %v2394_v57 = vrot.slane %v2393_v52, 2  ;;  %v2401_v7 = vrot.slane %v2400_v2, 2  ;;  %v2414_v47 = vmax.f32 %v2412_v37, %v2413_v5  ;;  %v2420_v14 = vrot.slane %v2419_v33, 4 }
 0x217   :  { %4187 = vst [vmem:[#allocation6_spill] sm:$0xff] %v4019_v30  ;;  %v4023_v3 = vmax.f32 %v2360_v35, %v2361_v41  ;;  %v4025_v18 = vmax.f32 %v2367_v43, %v2368_v26  ;;  %v2426_v59 = vsel %vm2138_vm2, %v4191_v23, -inf  ;;  %v2433_v61 = vsel %vm2138_vm2, %v3878_v13, -inf }
 0x218   :  { %v4031_v4 = vmax.f32 %v2374_v15, %v2375_v38  ;;  %v2408_v6 = vrot.slane %v2407_v32, 2  ;;  %v2415_v42 = vrot.slane %v2414_v47, 2  ;;  %v2421_v51 = vmax.f32 %v2419_v33, %v2420_v14 }
 0x219   :  { %4189 = vst [vmem:[#allocation7_spill] sm:$0xff] %v4023_v3  ;;  %4190 = vst [vmem:[#allocation8_spill] sm:$0xff] %v4025_v18  ;;  %v4033_v17 = vmax.f32 %v2381_v40, %v2382_v28  ;;  %v2427_v54 = vrot.slane %v2426_v59, 4  ;;  %v2434_v37 = vrot.slane %v2433_v61, 4  ;;  %v2440_v35 = vsel %vm2138_vm2, %v3881_v27, -inf }
 0x21a   :  { %4192 = vst [vmem:[#allocation9_spill] sm:$0xff] %v4031_v4  ;;  %v2389_v43 = vrot.slane %v2388_v36, 1  ;;  %v2395_v41 = vmax.f32 %v2393_v52, %v2394_v57  ;;  %v2402_v26 = vmax.f32 %v2400_v2, %v2401_v7  ;;  %v2422_v5 = vrot.slane %v2421_v51, 2 }
 0x21b   :  { %4193 = vst [vmem:[#allocation13_spill] sm:$0xff] %v4033_v17  ;;  %v2428_v1 = vmax.f32 %v2426_v59, %v2427_v54  ;;  %v2435_v23 = vmax.f32 %v2433_v61, %v2434_v37  ;;  %v2441_v18 = vrot.slane %v2440_v35, 4  ;;  %v2447_v13 = vsel %vm2138_vm2, %v3884_v34, -inf  ;;  %v4194_v37 = vld [vmem:[#allocation10_spill] sm:$0xff] }
 0x21c   :  { %v2409_v15 = vmax.f32 %v2407_v32, %v2408_v6  ;;  %v2416_v38 = vmax.f32 %v2414_v47, %v2415_v42  ;;  %v2423_v33 = vmax.f32 %v2421_v51, %v2422_v5  ;;  %v2448_v40 = vrot.slane %v2447_v13, 4 }
 0x21d   :  { %v2429_v28 = vrot.slane %v2428_v1, 2  ;;  %v2436_v14 = vrot.slane %v2435_v23, 2  ;;  %v2442_v17 = vmax.f32 %v2440_v35, %v2441_v18  ;;  %v2454_v27 = vsel %vm2138_vm2, %v3887_v44, -inf }
 0x21e   :  { %v2396_v4 = vrot.slane %v2395_v41, 1  ;;  %v2403_v52 = vrot.slane %v2402_v26, 1  ;;  %v2449_v2 = vmax.f32 %v2447_v13, %v2448_v40  ;;  %v2455_v57 = vrot.slane %v2454_v27, 4 }
 0x21f   :  { %v2430_v7 = vmax.f32 %v2428_v1, %v2429_v28  ;;  %v2437_v59 = vmax.f32 %v2435_v23, %v2436_v14  ;;  %v2443_v61 = vrot.slane %v2442_v17, 2  ;;  %v2461_v34 = vsel %vm2138_vm2, %v3892_v39, -inf }
 0x220   :  { %v2410_v32 = vrot.slane %v2409_v15, 1  ;;  %v2450_v47 = vrot.slane %v2449_v2, 2  ;;  %v2456_v6 = vmax.f32 %v2454_v27, %v2455_v57  ;;  %v2462_v42 = vrot.slane %v2461_v34, 4 }
 0x221   :  { %v2417_v51 = vrot.slane %v2416_v38, 1  ;;  %v2424_v54 = vrot.slane %v2423_v33, 1  ;;  %v2444_v18 = vmax.f32 %v2442_v17, %v2443_v61  ;;  %v2468_v44 = vsel %vm2138_vm2, %v4194_v37, -inf }
 0x222   :  { %v2451_v35 = vmax.f32 %v2449_v2, %v2450_v47  ;;  %v2457_v5 = vrot.slane %v2456_v6, 2  ;;  %v2463_v13 = vmax.f32 %v2461_v34, %v2462_v42  ;;  %v2469_v40 = vrot.slane %v2468_v44, 4 }
 0x223   :  { %v4045_v1 = vmax.f32 %v2388_v36, %v2389_v43  ;;  %v2431_v23 = vrot.slane %v2430_v7, 1  ;;  %v2438_v28 = vrot.slane %v2437_v59, 1  ;;  %v2445_v14 = vrot.slane %v2444_v18, 1 }
 0x224   :  { %v4047_v39 = vmax.f32 %v2395_v41, %v2396_v4  ;;  %v2458_v3 = vmax.f32 %v2456_v6, %v2457_v5  ;;  %v2464_v27 = vrot.slane %v2463_v13, 2  ;;  %v2470_v57 = vmax.f32 %v2468_v44, %v2469_v40  ;;  %v4195_v41 = vld [vmem:[#allocation11_spill] sm:$0xff] }
 0x225   :  { %v4049_v30 = vmax.f32 %v2402_v26, %v2403_v52  ;;  %v4051_v17 = vmax.f32 %v2409_v15, %v2410_v32  ;;  %v4053_v61 = vmax.f32 %v2416_v38, %v2417_v51  ;;  %v2452_v2 = vrot.slane %v2451_v35, 1  ;;  %v4196_v15 = vld [vmem:[#allocation12_spill] sm:$0xff] }
 0x226   :  { %v4055_v47 = vmax.f32 %v2423_v33, %v2424_v54  ;;  %v2459_v34 = vrot.slane %v2458_v3, 1  ;;  %v2465_v36 = vmax.f32 %v2463_v13, %v2464_v27  ;;  %v2471_v43 = vrot.slane %v2470_v57, 2  ;;  %v4198_v27 = vld [vmem:[#allocation6_spill] sm:$0xff] }
 0x227   :  { %v4057_v42 = vmax.f32 %v2430_v7, %v2431_v23  ;;  %v4059_v37 = vmax.f32 %v2437_v59, %v2438_v28  ;;  %v4061_v4 = vmax.f32 %v2444_v18, %v2445_v14  ;;  %v2587_v6 = vmax.f32 %v4195_v41, 0.0  ;;  %v4197_v28 = vld [vmem:[#allocation5_spill] sm:$0xff] }
 0x228   :  { %v2466_v26 = vrot.slane %v2465_v36, 1  ;;  %v2472_v52 = vmax.f32 %v2470_v57, %v2471_v43  ;;  %v2588_v32 = vmax.f32 %v4196_v15, 0.0  ;;  %v2589_v38 = vmax.f32 %v3915_v58, 0.0  ;;  %v4199_v57 = vld [vmem:[#allocation7_spill] sm:$0xff] }
 0x229   :  { %v4066_v51 = vmax.f32 %v2451_v35, %v2452_v2  ;;  %v2590_v33 = vmax.f32 %v3917_v56, 0.0  ;;  %v2591_v54 = vmax.f32 %v3919_v20, 0.0  ;;  %v2592_v7 = vmax.f32 %v3921_v29, 0.0  ;;  %v4200_v2 = vld [vmem:[#allocation8_spill] sm:$0xff] }
 0x22a   :  { %v4071_v59 = vmax.f32 %v2458_v3, %v2459_v34  ;;  %v2473_v18 = vrot.slane %v2472_v52, 1  ;;  %v2593_v44 = vmax.f32 %v3923_v48, 0.0  ;;  %v2594_v5 = vmax.f32 %v3927_v21, 0.0  ;;  %v4201_v34 = vld [vmem:[#allocation9_spill] sm:$0xff] }
 0x22b   :  { %v2595_v13 = vmax.f32 %v3929_v25, 0.0  ;;  %v2596_v40 = vmax.f32 %v3933_v24, 0.0  ;;  %v2597_v58 = vmax.f32 %v3939_v12, 0.0  ;;  %v2598_v35 = vmax.f32 %v3947_v49, 0.0 }
 0x22c   :  { %v4079_v56 = vmax.f32 %v2465_v36, %v2466_v26  ;;  %v2599_v20 = vmax.f32 %v3951_v55, 0.0  ;;  %v2600_v29 = vmax.f32 %v3953_v9, 0.0  ;;  %v2601_v3 = vmax.f32 %v3955_v60, 0.0  ;;  %v4202_v36 = vld [vmem:[#allocation13_spill] sm:$0xff] }
 0x22d   :  { %v2602_v48 = vmax.f32 %v3959_v63, 0.0  ;;  %v2603_v21 = vmax.f32 %v3961_v22, 0.0  ;;  %v2604_v25 = vmax.f32 %v3965_v46, 0.0  ;;  %v2605_v24 = vmax.f32 %v3977_v16, 0.0 }
 0x22e   :  { %v4088_v23 = vmax.f32 %v2472_v52, %v2473_v18  ;;  %v2606_v12 = vmax.f32 %v3979_v50, 0.0  ;;  %v2607_v49 = vmax.f32 %v3983_v11, 0.0  ;;  %v2608_v55 = vmax.f32 %v3985_v19, 0.0 }
 0x22f   :  { %v2609_v9 = vmax.f32 %v3989_v0, 0.0  ;;  %v2610_v60 = vmax.f32 %v3993_v53, 0.0  ;;  %v2611_v63 = vmax.f32 %v3995_v8, 0.0  ;;  %v2612_v22 = vmax.f32 %v3999_v62, 0.0 }
 0x230   :  { %v2613_v46 = vmax.f32 %v4007_v45, 0.0  ;;  %v2614_v16 = vmax.f32 %v4011_v10, 0.0  ;;  %v2615_v14 = vmax.f32 %v4197_v28, 0.0  ;;  %v2616_v50 = vmax.f32 %v4017_v31, 0.0 }
 0x231   :  { %v2617_v11 = vmax.f32 %v4198_v27, 0.0  ;;  %v2618_v19 = vmax.f32 %v4199_v57, 0.0  ;;  %v2619_v0 = vmax.f32 %v4200_v2, 0.0  ;;  %v2620_v53 = vmax.f32 %v4201_v34, 0.0 }
 0x232   :  { %v2621_v8 = vmax.f32 %v4202_v36, 0.0  ;;  %v2622_v62 = vmax.f32 %v4045_v1, 0.0  ;;  %v2623_v45 = vmax.f32 %v4047_v39, 0.0  ;;  %v2624_v10 = vmax.f32 %v4049_v30, 0.0 }
 0x233   :  { %v2625_v43 = vmax.f32 %v4051_v17, 0.0  ;;  %v2626_v31 = vmax.f32 %v4053_v61, 0.0  ;;  %v2716_v41 = vsel %vm2715_vm3, %v2589_v38, %v2587_v6  ;;  %v2729_v26 = vsel %vm2715_vm3, %v2590_v33, %v2588_v32 }
 0x234   :  { %v2718_v52 = vsel %vm2717_vm4, %v2591_v54, %v2716_v41  ;;  %v2730_v15 = vsel %vm2717_vm4, %v2592_v7, %v2729_v26  ;;  %v2736_v18 = vsel %vm2715_vm3, %v2605_v24, %v2603_v21  ;;  %v2743_v1 = vsel %vm2715_vm3, %v2606_v12, %v2604_v25 }
 0x235   :  { %v2720_v39 = vsel %vm2719_vm5, %v2593_v44, %v2718_v52  ;;  %v2731_v30 = vsel %vm2719_vm5, %v2594_v5, %v2730_v15  ;;  %v2737_v17 = vsel %vm2717_vm4, %v2607_v49, %v2736_v18  ;;  %v2744_v61 = vsel %vm2717_vm4, %v2608_v55, %v2743_v1 }
 0x236   :  { %v2722_v6 = vsel %vm2721_vm6, %v2595_v13, %v2720_v39  ;;  %v2732_v32 = vsel %vm2721_vm6, %v2596_v40, %v2731_v30  ;;  %v2738_v38 = vsel %vm2719_vm5, %v2609_v9, %v2737_v17  ;;  %v2745_v33 = vsel %vm2719_vm5, %v2610_v60, %v2744_v61 }
 0x237   :  { %v2724_v54 = vsel %vm2723_vm7, %v2597_v58, %v2722_v6  ;;  %v2733_v7 = vsel %vm2723_vm7, %v2598_v35, %v2732_v32  ;;  %v2739_v44 = vsel %vm2721_vm6, %v2611_v63, %v2738_v38  ;;  %v2746_v5 = vsel %vm2721_vm6, %v2612_v22, %v2745_v33 }
 0x238   :  { %v2726_v21 = vsel %vm2725_vm8, %v2599_v20, %v2724_v54  ;;  %v2734_v25 = vsel %vm2725_vm8, %v2600_v29, %v2733_v7  ;;  %v2740_v13 = vsel %vm2723_vm7, %v2613_v46, %v2739_v44  ;;  %v2747_v40 = vsel %vm2723_vm7, %v2614_v16, %v2746_v5 }
 0x239   :  { %v2728_v24 = vsel %vm2727_vm9, %v2601_v3, %v2726_v21  ;;  %v2735_v12 = vsel %vm2727_vm9, %v2602_v48, %v2734_v25  ;;  %v2741_v58 = vsel %vm2725_vm8, %v2615_v14, %v2740_v13  ;;  %v2748_v35 = vsel %vm2725_vm8, %v2616_v50, %v2747_v40 }
 0x23a   :  { %v2742_v49 = vsel %vm2727_vm9, %v2617_v11, %v2741_v58  ;;  %v2749_v55 = vsel %vm2727_vm9, %v2618_v19, %v2748_v35  ;;  %v2750_v20 = vsel %vm2715_vm3, %v2621_v8, %v2619_v0  ;;  %v2757_v29 = vsel %vm2715_vm3, %v2622_v62, %v2620_v53  ;;  %2786 = vst [vmem:[#allocation2] sm:$0xff] %v2728_v24 }
 0x23b   :  { %2787 = vst [vmem:[#allocation2 + $0x8] sm:$0xff] %v2735_v12  ;;  %v2627_v9 = vmax.f32 %v4055_v47, 0.0  ;;  %v2628_v3 = vmax.f32 %v4057_v42, 0.0  ;;  %v2751_v48 = vsel %vm2717_vm4, %v2623_v45, %v2750_v20  ;;  %v2758_v60 = vsel %vm2717_vm4, %v2624_v10, %v2757_v29  ;;  %2788 = vst [vmem:[#allocation2 + $0x10] sm:$0xff] %v2742_v49 }
 0x23c   :  { %2789 = vst [vmem:[#allocation2 + $0x18] sm:$0xff] %v2749_v55  ;;  %v2629_v63 = vmax.f32 %v4059_v37, 0.0  ;;  %v2630_v22 = vmax.f32 %v4061_v4, 0.0  ;;  %v2752_v46 = vsel %vm2719_vm5, %v2625_v43, %v2751_v48  ;;  %v2759_v16 = vsel %vm2719_vm5, %v2626_v31, %v2758_v60 }
 0x23d   :  { %v2631_v47 = vmax.f32 %v4066_v51, 0.0  ;;  %v2632_v42 = vmax.f32 %v4071_v59, 0.0  ;;  %v2753_v28 = vsel %vm2721_vm6, %v2627_v9, %v2752_v46  ;;  %v2760_v14 = vsel %vm2721_vm6, %v2628_v3, %v2759_v16 }
 0x23e   :  { %v2633_v50 = vmax.f32 %v4079_v56, 0.0  ;;  %v2634_v27 = vmax.f32 %v4088_v23, 0.0  ;;  %v2754_v37 = vsel %vm2723_vm7, %v2629_v63, %v2753_v28  ;;  %v2761_v4 = vsel %vm2723_vm7, %v2630_v22, %v2760_v14 }
 0x23f   :  { %v2755_v11 = vsel %vm2725_vm8, %v2631_v47, %v2754_v37  ;;  %v2762_v57 = vsel %vm2725_vm8, %v2632_v42, %v2761_v4 }
 0x240   :  { %v2756_v51 = vsel %vm2727_vm9, %v2633_v50, %v2755_v11  ;;  %v2763_v59 = vsel %vm2727_vm9, %v2634_v27, %v2762_v57 }
 0x241   :  { %2790 = vst [vmem:[#allocation2 + $0x20] sm:$0xff] %v2756_v51  ;;  %2791 = vst [vmem:[#allocation2 + $0x28] sm:$0xff] %v2763_v59 }
 0x242   :  { %2862 = shalt.err (!%p2859_p4)
}
 0x243   :  { %s2876_s10 = smov 256   ;;  %s2877_s11 = smov 16  }
 0x244   :  { %2805 = dma.vmem_to_hbm [thread:$0]  %s2800_s3, 1024, %s4168_s4, [#allocation3], %s2876_s10, %s2876_s10, %s2877_s11  }
 0x245   :  { %2871 = dma.done.wait [#allocation3], 1024  }
 0x246   :  { %2872 = vsyncadd [#allocation3], 4294966272 }
 0x247   :  { %2809 = vsyncpa [#allocation3], 1 }

</bundles_post_ra>
